<compile_context>
chip_gen: v6e
topology: v6e:2x2x1
jax: 0.10.0
libtpu: 0.0.40
codegen_flags: <defaults>
</compile_context>

<pallas_src>
import functools
import math

import jax
import jax.numpy as jnp
from jax import lax
from jax.experimental import pallas as pl
from jax.experimental.pallas import tpu as pltpu


# ---------------------------------------------------------------------------
# Kernel
# ---------------------------------------------------------------------------
def _self_attn_kernel(xq_ref, xf_ref, wq_ref, bq_ref, wkv_ref, bkv_ref,
                      o_ref, k_sc, v_sc, *, d_pad):
    """One grid step = one (batch element, query-row tile).

    Grid: (B, HW // tq); b is "parallel" (megacore), qi is "arbitrary"
    (sequential, innermost) so the K/V scratch computed at qi == 0 is valid for
    every later query tile of the same batch element.

    xq_ref  : (1, tq, C)     bf16  query rows (also the residual input)
    xf_ref  : (1, HW, C)     bf16  full sequence (K/V source, resident across qi)
    wq_ref  : (C, 128)       bf16  Q projection, scale folded, zero-padded lanes
    bq_ref  : (1, 128)       f32
    wkv_ref : (C, 128 + C)   bf16  [K zero-padded to 128 | V * gamma]
    bkv_ref : (1, 128 + C)   f32
    o_ref   : (1, tq, C)     f32   x + gamma * attention(x)
    k_sc    : (HW, 128)      bf16  VMEM K cache for this batch element
    v_sc    : (HW, C)        bf16  VMEM V cache (gamma pre-folded)
    """
    qi = pl.program_id(1)

    # K/V projection once per batch element; scratch persists across qi.
    @pl.when(qi == 0)
    def _():
        xf = xf_ref[0]                                               # (HW, C) bf16
        kv = jnp.dot(xf, wkv_ref[...],
                     preferred_element_type=jnp.float32) + bkv_ref[...]
        k_sc[...] = kv[:, :d_pad].astype(jnp.bfloat16)               # lane offset 0
        v_sc[...] = kv[:, d_pad:].astype(jnp.bfloat16)               # lane offset 128

    xq = xq_ref[0]                                                   # (tq, C) bf16

    # Q projection (d_qk ** -0.5 folded into wq/bq); padded lanes are exact 0.
    q = (jnp.dot(xq, wq_ref[...], preferred_element_type=jnp.float32)
         + bq_ref[...]).astype(jnp.bfloat16)                         # (tq, 128)

    # energy = q @ k^T: contract the last dim of both operands so Mosaic feeds
    # K as the transposed MXU side (no explicit transpose); padded lanes of q
    # and k are zeros and contribute exactly 0.
    energy = lax.dot_general(
        q, k_sc[...],
        dimension_numbers=(((1,), (1,)), ((), ())),
        preferred_element_type=jnp.float32)                          # (tq, HW)

    # Numerically stable softmax in f32, with DEFERRED normalization: the divide
    # moves off the (tq, HW) matrix onto the (tq, C) output.
    m = jnp.max(energy, axis=-1, keepdims=True)
    p = jnp.exp(energy - m)
    l = jnp.sum(p, axis=-1, keepdims=True)                           # (tq, 1)

    out = jnp.dot(p.astype(jnp.bfloat16), v_sc[...],
                  preferred_element_type=jnp.float32)                # (tq, C)
    out = out * pl.reciprocal(l, approx=True)                        # EUP slot, ~free

    # gamma is folded into V -> plain residual add (f32).
    o_ref[0] = (xq.astype(jnp.float32) + out).astype(o_ref.dtype)


# ---------------------------------------------------------------------------
# Wrapper helpers
# ---------------------------------------------------------------------------
def _slab_width(d_qk):
    """128-lane-aligned width for the padded Q / K slabs."""
    return max(128, ((d_qk + 127) // 128) * 128)


def _prepare_weights(params, d_pad):
    """Fold the softmax scale into Q and gamma into V, zero-pad Q/K to 128-lane
    slabs, cast the matmul-operand weights to bf16 (biases stay f32)."""
    w_qk, b_qk, w_v, b_v, gamma = params
    w_qk = jnp.asarray(w_qk, jnp.float32)
    w_v = jnp.asarray(w_v, jnp.float32)
    c = w_qk.shape[0]
    d_qk = w_qk.shape[1] // 2
    scale = float(d_qk) ** -0.5
    g = jnp.asarray(gamma, jnp.float32).reshape(())
    b_qk = jnp.asarray(b_qk, jnp.float32).reshape(1, 2 * d_qk)
    b_v = jnp.asarray(b_v, jnp.float32).reshape(1, -1)

    wq = jnp.zeros((c, d_pad), jnp.float32).at[:, :d_qk].set(w_qk[:, :d_qk] * scale)
    bq = jnp.zeros((1, d_pad), jnp.float32).at[:, :d_qk].set(b_qk[:, :d_qk] * scale)
    wk = jnp.zeros((c, d_pad), jnp.float32).at[:, :d_qk].set(w_qk[:, d_qk:])
    bk = jnp.zeros((1, d_pad), jnp.float32).at[:, :d_qk].set(b_qk[:, d_qk:])
    wv = w_v * g                          # attn @ (g * v) == g * (attn @ v)
    bv = b_v * g

    wkv = jnp.concatenate([wk, wv], axis=1)          # (C, 128 + C), both slabs aligned
    bkv = jnp.concatenate([bk, bv], axis=1)          # (1, 128 + C)
    return wq.astype(jnp.bfloat16), bq, wkv.astype(jnp.bfloat16), bkv


def _vmem_budget_bytes():
    """Generation-aware VMEM budget: ~75% of per-core capacity, capped at 100 MiB
    (v5e/v6e: 128 MiB physical -> ~96-100 MiB; v7x: 64 MiB -> 48 MiB)."""
    cap = 64 << 20                                   # conservative fallback (v7x)
    try:
        info = pltpu.get_tpu_info()
        cap = int(getattr(info, "vmem_capacity_bytes", cap) or cap)
    except Exception:
        pass
    return min((cap * 3) // 4, 100 << 20)


def _working_set_bytes(hw, c, tq, d_pad):
    """Rough per-step VMEM model (double-buffered pipeline blocks + scratch +
    f32 intermediates) used to pick the query tile size."""
    bf, f32 = 2, 4
    f_kv = d_pad + c
    ws = 2 * tq * c * bf                          # query tile (double-buffered)
    ws += 2 * hw * c * bf                         # full-sequence block
    ws += 2 * tq * c * f32                        # output tile
    ws += 2 * (c * d_pad * bf + d_pad * f32)      # wq + bq
    ws += 2 * (c * f_kv * bf + f_kv * f32)        # wkv + bkv
    ws += hw * (d_pad + c) * bf                   # K/V scratch
    ws += hw * f_kv * f32                         # kv projection intermediate
    ws += tq * hw * (f32 + bf)                    # energy + p
    ws += tq * (d_pad + 2 * c) * f32              # q / out / residual temps
    return ws


def _pick_q_tile(hw, c, d_pad, budget):
    """Largest query-row tile (multiples of 256 preferred for v6e/v7x MXU, 128
    otherwise) whose working set fits the VMEM budget."""
    cands = [t for t in (2048, 1024, 512, 256) if hw % t == 0]
    cands += [t for t in (128,) if hw % t == 0]
    if not cands:
        cands = [hw]                              # tiny / odd feature maps: one tile
    for tq in cands:
        if _working_set_bytes(hw, c, tq, d_pad) <= budget:
            return tq
    return cands[-1]


# ---------------------------------------------------------------------------
# Public wrapper
# ---------------------------------------------------------------------------
def self_attention_2d(x_nchw, params, *, n_heads=1, q_tile=None):
    """Forward pass of SelfAttention2d.  x_nchw: (B, C, H, W) float32."""
    if n_heads != 1:
        # TODO(synk): n_heads > 1 not implemented (the module's trailing
        # rearrange back to NCHW only type-checks for n_heads == 1 anyway).
        raise NotImplementedError("Pallas SelfAttention2d supports n_heads == 1 only")

    w_qk = jnp.asarray(params[0])
    B, C, H, W = x_nchw.shape
    HW = H * W
    d_qk = w_qk.shape[1] // 2
    d_pad = _slab_width(d_qk)
    f_kv = d_pad + C

    wq, bq, wkv, bkv = _prepare_weights(params, d_pad)

    # NCHW -> (B, HW, C) in bf16 (halves HBM traffic / VMEM; matmuls accumulate f32).
    # TODO(synk): keep activations in (B, C, HW) and transpose the weights instead,
    #             eliminating these wrapper-side transpose HBM passes.
    x_seq = jnp.transpose(x_nchw, (0, 2, 3, 1)).reshape(B, HW, C).astype(jnp.bfloat16)

    budget = _vmem_budget_bytes()
    tq = q_tile or _pick_q_tile(HW, C, d_pad, budget)
    grid = (B, HW // tq)

    kernel = functools.partial(_self_attn_kernel, d_pad=d_pad)

    out_seq = pl.pallas_call(
        kernel,
        out_shape=jax.ShapeDtypeStruct((B, HW, C), jnp.float32),
        grid_spec=pltpu.PrefetchScalarGridSpec(
            num_scalar_prefetch=0,
            grid=grid,
            in_specs=[
                pl.BlockSpec((1, tq, C), lambda b, qi: (b, qi, 0)),   # query tile
                pl.BlockSpec((1, HW, C), lambda b, qi: (b, 0, 0)),    # full sequence
                pl.BlockSpec((C, d_pad), lambda b, qi: (0, 0)),       # wq
                pl.BlockSpec((1, d_pad), lambda b, qi: (0, 0)),       # bq
                pl.BlockSpec((C, f_kv), lambda b, qi: (0, 0)),        # wkv
                pl.BlockSpec((1, f_kv), lambda b, qi: (0, 0)),        # bkv
            ],
            out_specs=pl.BlockSpec((1, tq, C), lambda b, qi: (b, qi, 0)),
            scratch_shapes=[
                pltpu.VMEM((HW, d_pad), jnp.bfloat16),                # K cache
                pltpu.VMEM((HW, C), jnp.bfloat16),                    # V cache (gamma folded)
            ],
        ),
        compiler_params=pltpu.CompilerParams(
            dimension_semantics=("parallel", "arbitrary"),
            vmem_limit_bytes=budget,
        ),
    )(x_seq, x_seq, wq, bq, wkv, bkv)

    # (B, HW, C) -> NCHW
    return out_seq.reshape(B, H, W, C).transpose(0, 3, 1, 2)


# ---------------------------------------------------------------------------
# References
# ---------------------------------------------------------------------------
def _reference(x_nchw, params):
    """Pure-JAX f32 reference matching the PyTorch forward semantics (n_heads == 1)."""
    w_qk, b_qk, w_v, b_v, gamma = params
    B, C, H, W = x_nchw.shape
    d_qk = w_qk.shape[1] // 2
    x_seq = jnp.transpose(x_nchw, (0, 2, 3, 1)).reshape(B, H * W, C)
    qk = jnp.einsum('bsc,ce->bse', x_seq, w_qk) + b_qk
    q, k = qk[..., :d_qk], qk[..., d_qk:]
    v = jnp.einsum('bsc,ce->bse', x_seq, w_v) + b_v
    energy = jnp.einsum('bqd,bkd->bqk', q, k) * (d_qk ** -0.5)
    attn = jax.nn.softmax(energy, axis=-1)
    out = jnp.einsum('bqk,bkd->bqd', attn, v)
    out_seq = x_seq + gamma * out
    return out_seq.reshape(B, H, W, C).transpose(0, 3, 1, 2)


def _reference_matched(x_nchw, params):
    """Pure-JAX reference applying the SAME bf16-operand / f32-accumulate matmul
    scheme and weight folding as the kernel (tight check of kernel logic)."""
    B, C, H, W = x_nchw.shape
    d_qk = jnp.asarray(params[0]).shape[1] // 2
    d_pad = _slab_width(d_qk)
    wq, bq, wkv, bkv = _prepare_weights(params, d_pad)
    xs = jnp.transpose(x_nchw, (0, 2, 3, 1)).reshape(B, H * W, C).astype(jnp.bfloat16)

    def dot32(a, b, dims):
        return lax.dot_general(a, b, dimension_numbers=(dims, ((), ())),
                               preferred_element_type=jnp.float32)

    def one(xb):
        q = (dot32(xb, wq, ((1,), (0,))) + bq).astype(jnp.bfloat16)
        kv = dot32(xb, wkv, ((1,), (0,))) + bkv
        k = kv[:, :d_pad].astype(jnp.bfloat16)
        v = kv[:, d_pad:].astype(jnp.bfloat16)
        e = dot32(q, k, ((1,), (1,)))
        m = jnp.max(e, axis=-1, keepdims=True)
        p = jnp.exp(e - m)
        l = jnp.sum(p, axis=-1, keepdims=True)
        o = dot32(p.astype(jnp.bfloat16), v, ((1,), (0,)))
        return xb.astype(jnp.float32) + o / l

    out = jax.vmap(one)(xs)
    return out.reshape(B, H, W, C).transpose(0, 3, 1, 2)


# ---------------------------------------------------------------------------
# Demo / self-test
# ---------------------------------------------------------------------------
if __name__ == "__main__":
    key = jax.random.PRNGKey(0)
    # SAGAN-realistic small shape: C is a multiple of 128 (lane-dense), HW = 256.
    B, C, H, W = 2, 128, 16, 16          # d_in = 128 -> d_qk = d_in // 8 = 16
    d_qk = C // 8
    kx, kqk, kbqk, kwv, kbv = jax.random.split(key, 5)

    x = jax.random.normal(kx, (B, C, H, W), jnp.float32)

    def xavier_uniform(k, shape):
        fan_in, fan_out = shape
        bound = math.sqrt(6.0 / (fan_in + fan_out))
        return jax.random.uniform(k, shape, jnp.float32, -bound, bound)

    w_qk = xavier_uniform(kqk, (C, 2 * d_qk))                    # EinMix weight 'c_i c_e'
    b_qk = 0.1 * jax.random.normal(kbqk, (1, 2 * d_qk), jnp.float32)
    w_v = xavier_uniform(kwv, (C, C))
    b_v = 0.1 * jax.random.normal(kbv, (1, C), jnp.float32)
    # PyTorch inits gamma to 0 (output == x); use a nonzero power-of-two value so
    # the attention path contributes (and scale/gamma folding commutes exactly
    # with the bf16 weight rounding in the matched reference).
    gamma = jnp.float32(0.5)

    params = (w_qk, b_qk, w_v, b_v, gamma)

    out = jax.block_until_ready(self_attention_2d(x, params))
    assert out.shape == x.shape, (out.shape, x.shape)

    # 1) Tight check against a reference with identical bf16-operand rounding:
    #    remaining deltas are f32 reassociation, deferred normalization and the
    #    approx reciprocal (~1e-4 rel).
    ref_m = _reference_matched(x, params)
    err_m = float(jnp.max(jnp.abs(out - ref_m)))
    assert jnp.allclose(out, ref_m, atol=1e-2, rtol=1e-2), f"matched-ref mismatch: {err_m}"

    # 2) Sanity band against the exact f32 module semantics: error budget is the
    #    bf16 quantization of activations/weights in the attention branch.
    ref = _reference(x, params)
    err = float(jnp.max(jnp.abs(out - ref)))
    assert jnp.allclose(out, ref, atol=1e-1, rtol=1e-1), f"mismatch vs f32 reference: {err}"

    print("KERNEL_OK")
</pallas_src>

<mosaic_0001>
module attributes {stable_mosaic.version = 11 : i64} {
  func.func @_self_attn_kernel(%arg0: i32, %arg1: i32, %arg2: memref<1x256x128xbf16, #tpu.memory_space<vmem>>, %arg3: memref<1x256x128xbf16, #tpu.memory_space<vmem>>, %arg4: memref<128x128xbf16, #tpu.memory_space<vmem>>, %arg5: memref<1x128xf32, #tpu.memory_space<vmem>>, %arg6: memref<128x256xbf16, #tpu.memory_space<vmem>>, %arg7: memref<1x256xf32, #tpu.memory_space<vmem>>, %arg8: memref<1x256x128xf32, #tpu.memory_space<vmem>>, %arg9: memref<256x128xbf16, #tpu.memory_space<vmem>>, %arg10: memref<256x128xbf16, #tpu.memory_space<vmem>>) attributes {dimension_semantics = [#tpu.dimension_semantics<parallel>, #tpu.dimension_semantics<arbitrary>], iteration_bounds = array<i64: 2, 1>, scalar_prefetch = 0 : i64, scratch_operands = 2 : i64, tpu.core_type = #tpu.core_type<tc>, window_params = [{transform_indices = @transform_0, window_bounds = array<i64: 1, 256, 128>}, {transform_indices = @transform_1, window_bounds = array<i64: 1, 256, 128>}, {pipeline_mode = #tpu.pipeline_mode<synchronous>, transform_indices = @transform_2, window_bounds = array<i64: 128, 128>}, {pipeline_mode = #tpu.pipeline_mode<synchronous>, transform_indices = @transform_3, window_bounds = array<i64: 1, 128>}, {pipeline_mode = #tpu.pipeline_mode<synchronous>, transform_indices = @transform_4, window_bounds = array<i64: 128, 256>}, {pipeline_mode = #tpu.pipeline_mode<synchronous>, transform_indices = @transform_5, window_bounds = array<i64: 1, 256>}, {transform_indices = @transform_6, window_bounds = array<i64: 1, 256, 128>}]} {
    %c0_i32 = arith.constant 0 : i32
    %0 = arith.cmpi eq, %arg1, %c0_i32 : i32
    %1 = arith.extui %0 : i1 to i32
    %c0_i32_0 = arith.constant 0 : i32
    %2 = arith.cmpi ne, %1, %c0_i32_0 : i32
    scf.if %2 {
      %c0_18 = arith.constant 0 : index
      %c0_19 = arith.constant 0 : index
      %c0_20 = arith.constant 0 : index
      %31 = vector.load %arg3[%c0_18, %c0_19, %c0_20] : memref<1x256x128xbf16, #tpu.memory_space<vmem>>, vector<1x256x128xbf16>
      %32 = vector.shape_cast %31 : vector<1x256x128xbf16> to vector<256x128xbf16>
      %c0_21 = arith.constant 0 : index
      %c0_22 = arith.constant 0 : index
      %33 = vector.load %arg6[%c0_21, %c0_22] : memref<128x256xbf16, #tpu.memory_space<vmem>>, vector<128x256xbf16>
      %cst_23 = arith.constant dense<0.000000e+00> : vector<256x256xf32>
      %34 = tpu.matmul %32, %33, %cst_23 {dimension_numbers = #tpu.dot_dimension_numbers<[1], [0], [0], [1], [0, 0, 1, 1], [], []>} : vector<256x128xbf16>, vector<128x256xbf16>, vector<256x256xf32> -> vector<256x256xf32>
      %c0_24 = arith.constant 0 : index
      %c0_25 = arith.constant 0 : index
      %35 = vector.load %arg7[%c0_24, %c0_25] : memref<1x256xf32, #tpu.memory_space<vmem>>, vector<1x256xf32>
      %36 = vector.broadcast %35 : vector<1x256xf32> to vector<256x256xf32>
      %37 = arith.addf %34, %36 : vector<256x256xf32>
      %38 = vector.extract_strided_slice %37 {offsets = [0, 0], sizes = [256, 128], strides = [1, 1]} : vector<256x256xf32> to vector<256x128xf32>
      %39 = arith.truncf %38 : vector<256x128xf32> to vector<256x128xbf16>
      %c0_26 = arith.constant 0 : index
      %c0_27 = arith.constant 0 : index
      %40 = vector.load %arg9[%c0_26, %c0_27] : memref<256x128xbf16, #tpu.memory_space<vmem>>, vector<256x128xbf16>
      tpu.vector_store %arg9[%c0_26, %c0_27], %39 {strides = array<i32>} : memref<256x128xbf16, #tpu.memory_space<vmem>>, vector<256x128xbf16>,
      %41 = vector.extract_strided_slice %37 {offsets = [0, 128], sizes = [256, 128], strides = [1, 1]} : vector<256x256xf32> to vector<256x128xf32>
      %42 = arith.truncf %41 : vector<256x128xf32> to vector<256x128xbf16>
      %c0_28 = arith.constant 0 : index
      %c0_29 = arith.constant 0 : index
      %43 = vector.load %arg10[%c0_28, %c0_29] : memref<256x128xbf16, #tpu.memory_space<vmem>>, vector<256x128xbf16>
      tpu.vector_store %arg10[%c0_28, %c0_29], %42 {strides = array<i32>} : memref<256x128xbf16, #tpu.memory_space<vmem>>, vector<256x128xbf16>,
    } else {
    }
    %c0 = arith.constant 0 : index
    %c0_1 = arith.constant 0 : index
    %c0_2 = arith.constant 0 : index
    %3 = vector.load %arg2[%c0, %c0_1, %c0_2] : memref<1x256x128xbf16, #tpu.memory_space<vmem>>, vector<1x256x128xbf16>
    %4 = vector.shape_cast %3 : vector<1x256x128xbf16> to vector<256x128xbf16>
    %c0_3 = arith.constant 0 : index
    %c0_4 = arith.constant 0 : index
    %5 = vector.load %arg4[%c0_3, %c0_4] : memref<128x128xbf16, #tpu.memory_space<vmem>>, vector<128x128xbf16>
    %cst = arith.constant dense<0.000000e+00> : vector<256x128xf32>
    %6 = tpu.matmul %4, %5, %cst {dimension_numbers = #tpu.dot_dimension_numbers<[1], [0], [0], [1], [0, 0, 1, 1], [], []>} : vector<256x128xbf16>, vector<128x128xbf16>, vector<256x128xf32> -> vector<256x128xf32>
    %c0_5 = arith.constant 0 : index
    %c0_6 = arith.constant 0 : index
    %7 = vector.load %arg5[%c0_5, %c0_6] : memref<1x128xf32, #tpu.memory_space<vmem>>, vector<1x128xf32>
    %8 = vector.broadcast %7 : vector<1x128xf32> to vector<256x128xf32>
    %9 = arith.addf %6, %8 : vector<256x128xf32>
    %10 = arith.truncf %9 : vector<256x128xf32> to vector<256x128xbf16>
    %c0_7 = arith.constant 0 : index
    %c0_8 = arith.constant 0 : index
    %11 = vector.load %arg9[%c0_7, %c0_8] : memref<256x128xbf16, #tpu.memory_space<vmem>>, vector<256x128xbf16>
    %cst_9 = arith.constant dense<0.000000e+00> : vector<256x256xf32>
    %12 = tpu.matmul %10, %11, %cst_9 {dimension_numbers = #tpu.dot_dimension_numbers<[1], [1], [0], [0], [0, 0, 1, 0], [], []>} : vector<256x128xbf16>, vector<256x128xbf16>, vector<256x256xf32> -> vector<256x256xf32>
    %cst_10 = arith.constant dense<0xFF800000> : vector<256xf32>
    %13 = vector.multi_reduction <maximumf>, %12, %cst_10 [1] : vector<256x256xf32> to vector<256xf32>
    %14 = vector.shape_cast %13 : vector<256xf32> to vector<256x1xf32>
    %15 = vector.broadcast %14 : vector<256x1xf32> to vector<256x256xf32>
    %16 = arith.subf %12, %15 : vector<256x256xf32>
    %17 = math.exp %16 : vector<256x256xf32>
    %cst_11 = arith.constant dense<0.000000e+00> : vector<256xf32>
    %18 = vector.multi_reduction <add>, %17, %cst_11 [1] : vector<256x256xf32> to vector<256xf32>
    %19 = vector.shape_cast %18 : vector<256xf32> to vector<256x1xf32>
    %20 = arith.truncf %17 : vector<256x256xf32> to vector<256x256xbf16>
    %c0_12 = arith.constant 0 : index
    %c0_13 = arith.constant 0 : index
    %21 = vector.load %arg10[%c0_12, %c0_13] : memref<256x128xbf16, #tpu.memory_space<vmem>>, vector<256x128xbf16>
    %cst_14 = arith.constant dense<0.000000e+00> : vector<256x128xf32>
    %22 = tpu.matmul %20, %21, %cst_14 {dimension_numbers = #tpu.dot_dimension_numbers<[1], [0], [0], [1], [0, 0, 1, 1], [], []>} : vector<256x256xbf16>, vector<256x128xbf16>, vector<256x128xf32> -> vector<256x128xf32>
    %23 = tpu.reciprocal %19 {approx = true} : vector<256x1xf32> -> vector<256x1xf32>
    %24 = vector.broadcast %23 : vector<256x1xf32> to vector<256x128xf32>
    %25 = arith.mulf %22, %24 : vector<256x128xf32>
    %26 = arith.extf %4 : vector<256x128xbf16> to vector<256x128xf32>
    %27 = arith.addf %26, %25 : vector<256x128xf32>
    %c0_15 = arith.constant 0 : index
    %c0_16 = arith.constant 0 : index
    %c0_17 = arith.constant 0 : index
    %28 = vector.load %arg8[%c0_15, %c0_16, %c0_17] : memref<1x256x128xf32, #tpu.memory_space<vmem>>, vector<1x256x128xf32>
    %29 = vector.shape_cast %28 : vector<1x256x128xf32> to vector<256x128xf32>
    %30 = vector.shape_cast %27 : vector<256x128xf32> to vector<1x256x128xf32>
    tpu.vector_store %arg8[%c0_15, %c0_16, %c0_17], %30 {strides = array<i32>} : memref<1x256x128xf32, #tpu.memory_space<vmem>>, vector<1x256x128xf32>,
    return
  }
  func.func @transform_0(%arg0: i32, %arg1: i32) -> (i32, i32, i32) {
    %c0_i32 = arith.constant 0 : i32
    %c0_i32_0 = arith.constant 0 : i32
    return %arg0, %arg1, %c0_i32 : i32, i32, i32
  }
  func.func @transform_1(%arg0: i32, %arg1: i32) -> (i32, i32, i32) {
    %c0_i32 = arith.constant 0 : i32
    %c0_i32_0 = arith.constant 0 : i32
    %c0_i32_1 = arith.constant 0 : i32
    return %arg0, %c0_i32, %c0_i32_0 : i32, i32, i32
  }
  func.func @transform_2(%arg0: i32, %arg1: i32) -> (i32, i32) {
    %c0_i32 = arith.constant 0 : i32
    %c0_i32_0 = arith.constant 0 : i32
    %c0_i32_1 = arith.constant 0 : i32
    return %c0_i32, %c0_i32_0 : i32, i32
  }
  func.func @transform_3(%arg0: i32, %arg1: i32) -> (i32, i32) {
    %c0_i32 = arith.constant 0 : i32
    %c0_i32_0 = arith.constant 0 : i32
    %c0_i32_1 = arith.constant 0 : i32
    return %c0_i32, %c0_i32_0 : i32, i32
  }
  func.func @transform_4(%arg0: i32, %arg1: i32) -> (i32, i32) {
    %c0_i32 = arith.constant 0 : i32
    %c0_i32_0 = arith.constant 0 : i32
    %c0_i32_1 = arith.constant 0 : i32
    return %c0_i32, %c0_i32_0 : i32, i32
  }
  func.func @transform_5(%arg0: i32, %arg1: i32) -> (i32, i32) {
    %c0_i32 = arith.constant 0 : i32
    %c0_i32_0 = arith.constant 0 : i32
    %c0_i32_1 = arith.constant 0 : i32
    return %c0_i32, %c0_i32_0 : i32, i32
  }
  func.func @transform_6(%arg0: i32, %arg1: i32) -> (i32, i32, i32) {
    %c0_i32 = arith.constant 0 : i32
    %c0_i32_0 = arith.constant 0 : i32
    return %arg0, %arg1, %c0_i32 : i32, i32, i32
  }
}

</mosaic_0001>

<bundles_post_ra>
// kernel: tpu_custom_call.1
= control target key start
LH: loop header
LB: loop body
LE: loop exit
PB: predicated region body
PF: predicated region fallthrough
CT: control target
= control target key end

     0   :  { %s4862_s0 = inlined_call_operand.hbm [shape: bf16[2,256,128], index: 0, kind: input, shape index: {}]   ;;  %s4863_s1 = inlined_call_operand.hbm [shape: bf16[2,256,128], index: 1, kind: input, shape index: {}]   ;;  %s4864_s2 = inlined_call_operand.hbm [shape: bf16[128,128], index: 2, kind: input, shape index: {}]   ;;  %s4865_s3 = inlined_call_operand.vmem [shape: f32[1,128], index: 3, kind: input, shape index: {}]   ;;  %s4866_s4 = inlined_call_operand.hbm [shape: bf16[128,256], index: 4, kind: input, shape index: {}]   ;;  %s4867_s5 = inlined_call_operand.vmem [shape: f32[1,256], index: 5, kind: input, shape index: {}]   ;;  %s4868_s6 = inlined_call_operand.hbm [shape: f32[2,256,128], index: 6, kind: output, shape index: {}]  }
   0x1   :  { %4887 = sst [smem:[#allocation32_spill]] %s4862_s0 }
   0x2   :  { %4888 = sst [smem:[#allocation33_spill]] %s4863_s1 }
   0x3   :  { %4889 = sst [smem:[#allocation34_spill]] %s4864_s2 }
   0x4   :  { %4890 = sst [smem:[#allocation35_spill]] %s4866_s4 }
   0x5   :  { %11 = vsyncpa [#allocation5], 0 }
   0x6   :  { %13 = vsyncpa [#allocation5 + $0x1], 0 }
   0x7   :  { %14 = vsyncpa [#allocation8], 0 }
   0x8   :  { %16 = vsyncpa [#allocation8 + $0x1], 0 }
   0x9   :  { %17 = vsyncpa [#allocation11], 0 }
   0xa   :  { %18 = vsyncpa [#allocation6], 0 }
   0xb   :  { %20 = vsyncpa [#allocation6 + $0x1], 0  ;;  %s4165_s21 = smov 0   ;;  %s4167_s22 = smov 0  }
   0xc   :  { %s4169_s23 = smov 0   ;;  %s4171_s24 = smov 0  }
   0xd   :  { %s4173_s25 = smov 0   ;;  %s4175_s26 = smov 0  }
   0xe LB: > { %s4196_s27 = sadd.s32 4294967295, %s4116_s26   ;;  %s2821_s28 = sadd.s32 4294967294, %s4116_s26   ;;  %s4116_s26 = sphi %s4175_s26, %s26_s26   ;;  %s4112_s25 = sphi %s4173_s25, %s4936_s25   ;;  %s4108_s24 = sphi %s4171_s24, %s4935_s24   ;;  %s4104_s23 = sphi %s4169_s23, %s4934_s23   ;;  %s4100_s22 = sphi %s4167_s22, %s4933_s22   ;;  %s4096_s21 = sphi %s4165_s21, %s4932_s21  }
   0xf   : > { %p60_p0 = scmp.ne.s32.totalorder %s4100_s22, %s4096_s21  ;;  %p61_p1 = scmp.eq.s32.totalorder %s4196_s27, 0 }
  0x10   : > { %p196_p2 = scmp.eq.s32.totalorder %s4196_s27, 1  ;;  %p202_p3 = scmp.eq.s32.totalorder %s2821_s28, 1 }
  0x11   : > { %p4205_p4 = por %p61_p1, %p60_p0  ;;  %p2822_p5 = scmp.ge.s32.totalorder %s4116_s26, 1 }
  0x12   : > { %p4210_p6 = por %p202_p3, %p60_p0  ;;  %p209_p7 = scmp.lt.s32.totalorder %s4116_s26, 3 }
  0x13   : > { %s4118_s8 = smov [#allocation9]   ;;  %s4119_s11 = smov [#allocation10]  }
  0x14   : > { %p4215_p8 = pnand %p2822_p5, %p209_p7  ;;  %s221_s9 = sshll.u32 %s4118_s8, 4  ;;  %s222_s9 = int_to_ptr.vmem [resolvable:$true] %s221_s9 }
  0x15   : > { %s237_s12 = sshll.u32 %s4119_s11, 4  ;;  %s3927_s13 = scalar_lea.vmem %s222_s9, 1024  ;;  %s238_s12 = int_to_ptr.vmem [resolvable:$true] %s237_s12 }
  0x16   : > { %p3515_p9 = pneg %p4215_p8  ;;  %p3928_p13 = scmp.ne.s32.totalorder %s222_s9, %s3927_s13 }
  0x17   : > { %p3935_p5 = scmp.lt.s32.totalorder %s222_s9, %s222_s9  ;;  %p3936_p7 = scmp.lt.s32.totalorder %s3927_s13, %s3927_s13 }
  0x18   : > { %p4224_p11 = pnand %p3515_p9, %p61_p1 }
  0x19   : > { %p3937_p10 = por %p3936_p7, %p3935_p5 }
  0x1a   : > { %p3918_p12 = pneg %p4224_p11 }
  0x1c   : > { %p3930_p0 = pnand %p3928_p13, %p3918_p12 }
  0x1e   : > { %p3931_p3 = pneg %p3930_p0 }
  0x20   : > { %p3938_p9 = pnand %p3937_p10, %p3931_p3 }
  0x22   : > { %3941 = shalt.err (!%p3938_p9)
}
  0x23   : > { %s4869_s14 = smov 64   ;;  %s4871_s15 = smov 4  }
  0x24   : > { %s4895_s2 = sld [smem:[#allocation34_spill]]  ;;  %s3953_s18 = scalar_lea.vmem %s238_s12, 2048 }
  0x25   : > { %p3954_p13 = scmp.ne.s32.totalorder %s238_s12, %s3953_s18  ;;  %p3961_p10 = scmp.lt.s32.totalorder %s238_s12, %s238_s12 }
  0x26   : > { %p3962_p3 = scmp.lt.s32.totalorder %s3953_s18, %s3953_s18 }
  0x27   : > { %p3956_p0 = pnand %p3954_p13, %p3918_p12 }
  0x28   : > { %p3963_p7 = por %p3962_p3, %p3961_p10 }
  0x29   : > { %p3957_p5 = pneg %p3956_p0 }
  0x2a   : > { %3518 = dma.hbm_to_vmem [thread:$0]  (!%p4224_p11), %s4895_s2, 1024, %s222_s9, [#allocation8], %s4869_s14, %s4869_s14, %s4871_s15  }
  0x2b   : > { %p3964_p9 = pnand %p3963_p7, %p3957_p5 }
  0x2d   : > { %3967 = shalt.err (!%p3964_p9)
}
  0x2e   : > { %s4122_s19 = smov 128   ;;  %s4123_s20 = smov 8  }
  0x2f   : > { %s4896_s4 = sld [smem:[#allocation35_spill]]  ;;  %s38_s9 = sadd.s32 1, %s4112_s25 }
  0x30   : > { %s47_s11 = sadd.s32 1, %s4104_s23  ;;  %p40_p12 = scmp.ge.s32.totalorder %s38_s9, 2 }
  0x31   : > { %p54_p13 = scmp.ne.s32.totalorder %s4104_s23, %s4100_s22  ;;  %p55_p0 = scmp.eq.s32.totalorder %s4116_s26, 0 }
  0x32   : > { %p3535_p5 = scmp.lt.s32.totalorder %s4116_s26, 2  ;;  %s4938_s9 = smov (%p40_p12, %s38_s9), 0 }
  0x33   : > { %4897 = sst [smem:[#allocation18_spill]] %s4938_s9  ;;  %p56_p10 = por %p55_p0, %p54_p13 }
  0x34   : > { %p4259_p3 = por %p196_p2, %p54_p13  ;;  %s42_s10 = ssub.s32 %s4112_s25, %s4938_s9 }
  0x35   : > { %3521 = dma.hbm_to_vmem [thread:$0]  (!%p4224_p11), %s4896_s4, 2048, %s238_s12, [#allocation11], %s4122_s19, %s4122_s19, %s4123_s20  }
  0x36   : > { %s254_s16 = sand.u32 1, %s4104_s23   ;;  %p45_p7 = scmp.eq.s32.totalorder %s42_s10, 0 }
  0x37   : > { %s4266_s12 = sshll.u32 %s254_s16, 7  ;;  %s2996_s17 = sshll.u32 %s4112_s25, 11 }
  0x38   : > { %s4270_s18 = scalar_select %p45_p7, %s4104_s23, %s47_s11  }
  0x39   : > { %s4899_s0 = sld [smem:[#allocation32_spill]]  ;;  %s258_s8 = scalar_lea.vmem [#allocation4], %s4266_s12 }
  0x3a   : > { %s267_s14 = sshll.u32 %s258_s8, 4  ;;  %p4278_p2 = pnand %p3535_p5, %p56_p10  ;;  %s268_s14 = int_to_ptr.vmem [resolvable:$true] %s267_s14 }
  0x3b   : > { %s4901_s1 = sld [smem:[#allocation33_spill]]  ;;  %s255_s11 = scalar_lea.sflag [#allocation5], %s254_s16 }
  0x3c   : > { %p3970_p11 = pneg %p4278_p2  ;;  %s3981_s19 = scalar_lea.vmem %s268_s14, 2048 }
  0x3d   : > { %p3982_p9 = scmp.ne.s32.totalorder %s268_s14, %s3981_s19  ;;  %s4124_s20 = smov [#allocation4]  }
  0x3e   : > { %s3986_s8 = sshll.u32 %s4124_s20, 4  ;;  %s3987_s8 = int_to_ptr.vmem [resolvable:$false] %s3986_s8 }
  0x3f   : > { %s266_s28 = scalar_lea.hbm %s4899_s0, %s2996_s17  ;;  %p3984_p12 = pnand %p3982_p9, %p3970_p11 }
  0x40   : > { %s3988_s0 = scalar_lea.vmem %s3987_s8, 4096  ;;  %p3989_p0 = scmp.lt.s32.totalorder %s268_s14, %s3987_s8 }
  0x41   : > { %s4285_s4 = scalar_lea.hbm %s4901_s1, %s2996_s17  ;;  %p3985_p13 = pneg %p3984_p12 }
  0x42   : > { %p3990_p5 = scmp.lt.s32.totalorder %s3988_s0, %s3981_s19 }
  0x44   : > { %p3991_p10 = por %p3990_p5, %p3989_p0 }
  0x46   : > { %p3992_p7 = pnand %p3991_p10, %p3985_p13 }
  0x48   : > { %3995 = shalt.err (!%p3992_p7)
}
  0x49   : > { %s4902_s2 = smov 4   ;;  %s4903_s16 = smov 64  }
  0x4a   : > { %3525 = dma.hbm_to_vmem [thread:$0]  (!%p4278_p2), %s266_s28, 2048, %s268_s14, %s255_s11, %s4903_s16, %s4903_s16, %s4902_s2  }
  0x4b   : > { %s281_s17 = scalar_lea.vmem [#allocation7], %s4266_s12  ;;  %s277_s1 = sand.u32 1, %s4116_s26  }
  0x4c   : > { %s288_s10 = sshll.u32 %s281_s17, 4  ;;  %s278_s20 = scalar_lea.sflag [#allocation8], %s277_s1  ;;  %s289_s10 = int_to_ptr.vmem [resolvable:$true] %s288_s10 }
  0x4d   : > { %s4009_s9 = scalar_lea.vmem %s289_s10, 2048  ;;  %s4125_s0 = smov [#allocation7]  }
  0x4e   : > { %p4010_p9 = scmp.ne.s32.totalorder %s289_s10, %s4009_s9  ;;  %s4014_s19 = sshll.u32 %s4125_s0, 4  ;;  %s4015_s19 = int_to_ptr.vmem [resolvable:$false] %s4014_s19 }
  0x4f   : > { %s4016_s8 = scalar_lea.vmem %s4015_s19, 4096  ;;  %p4017_p0 = scmp.lt.s32.totalorder %s289_s10, %s4015_s19 }
  0x50   : > { %p4012_p12 = pnand %p4010_p9, %p3970_p11  ;;  %p4018_p5 = scmp.lt.s32.totalorder %s4016_s8, %s4009_s9 }
  0x52   : > { %p4013_p13 = pneg %p4012_p12  ;;  %p4019_p10 = por %p4018_p5, %p4017_p0 }
  0x54   : > { %p4020_p7 = pnand %p4019_p10, %p4013_p13 }
  0x56   : > { %4023 = shalt.err (!%p4020_p7)
}
  0x57   : > { %3528 = dma.hbm_to_vmem [thread:$0]  (!%p4278_p2), %s4285_s4, 2048, %s289_s10, %s278_s20, %s4903_s16, %s4903_s16, %s4902_s2  }
  0x58   : > { %300 = sbr.rel (%p4215_p8) target bundleno = 1167 (0x48f), region = 44 }
  0x5d   : > { %s4311_s1 = sand.u32 1, %s4100_s22  }
  0x5e   : > { %s2833_s14 = sshll.u32 %s4311_s1, 7  ;;  %s303_s9 = scalar_lea.sflag [#allocation5], %s4311_s1 }
  0x5f   : > { %s4315_s12 = scalar_lea.vmem [#allocation4], %s2833_s14 }
  0x60   : > { %4075 = dma.done.wait (%p4205_p4), %s303_s9, 2048  }
  0x61   : > { %4077 = vsyncadd (%p4205_p4), %s303_s9, 4294965248  ;;  %s311_s4 = sand.u32 1, %s4196_s27   ;;  %s4322_s15 = scalar_lea.vmem [#allocation7], %s2833_s14 }
  0x62   : > { %s312_s7 = scalar_lea.sflag [#allocation8], %s311_s4 }
  0x63   : > { %4079 = dma.done.wait (%p4205_p4), %s312_s7, 2048  }
  0x64   : > { %4081 = vsyncadd (%p4205_p4), %s312_s7, 4294965248 }
  0x65   : > { %4083 = dma.done.wait (%p61_p1), [#allocation8], 1024  }
  0x66   : > { %4085 = vsyncadd (%p61_p1), [#allocation8], 4294966272 }
  0x67   : > { %4087 = dma.done.wait (%p61_p1), [#allocation11], 2048  }
  0x68   : > { %4089 = vsyncadd (%p61_p1), [#allocation11], 4294965248  ;;  %v4126_v0 = vmov 0   ;;  %v3596_v1 = vld [vmem:[#allocation10 + $0x74] ss:$8 sps:$4 sm:$0xff]   ;;  %v3620_v18 = vld [vmem:[%s4322_s15] sm:$0xff]   ;;  %v414_v57 = vlaneseq }
  0x69   : > { %632 = vmatprep.mubr.bf16.mxu0 %v4126_v0  ;;  %752 = vmatprep.mubr.bf16.mxu1 %v4126_v0  ;;  %v3598_v2 = vld [vmem:[#allocation10 + $0x70] ss:$8 sps:$4 sm:$0xff]   ;;  %v3599_v3 = vld [vmem:[#allocation10 + $0x64] ss:$8 sps:$4 sm:$0xff]   ;;  %v3601_v4 = vld [vmem:[#allocation10 + $0x60] ss:$8 sps:$4 sm:$0xff]  }
  0x6a   : > { %600 = vmatprep.subr.bf16.mxu0 %v3596_v1  ;;  %3485 = vmatprep.subr.bf16.mxu1 %v3596_v1  ;;  %v3602_v5 = vld [vmem:[#allocation10 + $0x54] ss:$8 sps:$4 sm:$0xff]   ;;  %v3604_v6 = vld [vmem:[#allocation10 + $0x50] ss:$8 sps:$4 sm:$0xff]   ;;  %v3605_v7 = vld [vmem:[#allocation10 + $0x44] ss:$8 sps:$4 sm:$0xff]  }
  0x6b   : > { %601 = vmatpush1.bf16.msra.mxu0 %v3598_v2  ;;  %3493 = vmatpush1.bf16.msra.mxu1 %v3598_v2  ;;  %v3607_v8 = vld [vmem:[#allocation10 + $0x40] ss:$8 sps:$4 sm:$0xff]   ;;  %v3608_v9 = vld [vmem:[#allocation10 + $0x34] ss:$8 sps:$4 sm:$0xff]   ;;  %v3610_v10 = vld [vmem:[#allocation10 + $0x30] ss:$8 sps:$4 sm:$0xff]  }
  0x6c   : > { %602 = vmatprep.subr.bf16.mxu0 %v3599_v3  ;;  %3486 = vmatprep.subr.bf16.mxu1 %v3599_v3  ;;  %v3611_v11 = vld [vmem:[#allocation10 + $0x24] ss:$8 sps:$4 sm:$0xff]   ;;  %v3613_v12 = vld [vmem:[#allocation10 + $0x20] ss:$8 sps:$4 sm:$0xff]   ;;  %v3614_v13 = vld [vmem:[#allocation10 + $0x14] ss:$8 sps:$4 sm:$0xff]  }
  0x6d   : > { %v3616_v14 = vld [vmem:[#allocation10 + $0x10] ss:$8 sps:$4 sm:$0xff]   ;;  %v3617_v15 = vld [vmem:[#allocation10 + $0x4] ss:$8 sps:$4 sm:$0xff]   ;;  %v3619_v16 = vld [vmem:[#allocation10] ss:$8 sps:$4 sm:$0xff]  }
  0x6e   : > { %v3636_v17 = vld [vmem:[#allocation9 + $0x38] sm:$0xff]   ;;  %v3624_v19 = vld [vmem:[%s4322_s15 + $0x60] sm:$0xff]   ;;  %v3637_v20 = vld [vmem:[#allocation9 + $0x30] sm:$0xff]   ;;  %v415_v58 = vshrl.u32 %v414_v57, 7  ;;  %s2837_s2 = sshll.u32 %s4311_s1, 8  ;;  %s3062_s17 = sshll.u32 %s4108_s24, 12 }
  0x6f   : > { %603 = vmatpush1.bf16.msra.mxu0 %v3601_v4  ;;  %3494 = vmatpush1.bf16.msra.mxu1 %v3601_v4  ;;  %v3638_v21 = vld [vmem:[#allocation9 + $0x28] sm:$0xff]   ;;  %v3639_v24 = vld [vmem:[#allocation9 + $0x20] sm:$0xff]   ;;  %v3640_v25 = vld [vmem:[#allocation9 + $0x18] sm:$0xff]   ;;  %s4758_s16 = scalar_lea.vmem [#allocation12], %s2837_s2  ;;  %s4811_s19 = scalar_lea.hbm %s4868_s6, %s3062_s17 }
  0x70   : > { %604 = vmatprep.subr.bf16.mxu0 %v3602_v5  ;;  %3487 = vmatprep.subr.bf16.mxu1 %v3602_v5  ;;  %v3621_v22 = vld [vmem:[%s4322_s15 + $0x8] sm:$0xff]   ;;  %v3622_v26 = vld [vmem:[%s4322_s15 + $0x10] sm:$0xff]   ;;  %v1113_v29 = vld [vmem:[%s4315_s12] sm:$0xff]   ;;  %v416_v59 = vsub.s32 0, %v415_v58  ;;  %v420_v61 = vsub.s32 1, %v415_v58  ;;  %s2691_s10 = sshll.u32 %s4758_s16, 4  ;;  %s4813_s10 = int_to_ptr.vmem [resolvable:$true] %s2691_s10 }
  0x71   : > { %v3626_v23 = vld [vmem:[%s4322_s15 + $0x68] sm:$0xff]   ;;  %v3628_v27 = vld [vmem:[%s4322_s15 + $0x70] sm:$0xff]   ;;  %v3623_v31 = vld [vmem:[%s4322_s15 + $0x18] sm:$0xff]   ;;  %s2676_s8 = scalar_lea.sflag [#allocation6], %s4311_s1  ;;  %s4024_s14 = scalar_lea.vmem %s4813_s10, 4096 }
  0x72   : > { %v3641_v28 = vld [vmem:[#allocation9 + $0x10] sm:$0xff]   ;;  %v3642_v30 = vld [vmem:[#allocation9 + $0x8] sm:$0xff]   ;;  %v3630_v32 = vld [vmem:[%s4322_s15 + $0x78] sm:$0xff]   ;;  %p4025_p1 = scmp.ne.s32.totalorder %s4813_s10, %s4024_s14  ;;  %s4127_s24 = smov [#allocation12]  }
  0x73   : > { %605 = vmatpush1.bf16.msra.mxu0 %v3604_v6  ;;  %3495 = vmatpush1.bf16.msra.mxu1 %v3604_v6  ;;  %v3643_v33 = vld [vmem:[#allocation9] sm:$0xff]   ;;  %v1115_v34 = vld [vmem:[%s4315_s12 + $0x8] sm:$0xff]   ;;  %v1117_v35 = vld [vmem:[%s4315_s12 + $0x10] sm:$0xff]   ;;  %s4028_s9 = sshll.u32 %s4127_s24, 4  ;;  %s4029_s9 = int_to_ptr.vmem [resolvable:$false] %s4028_s9 }
  0x74   : > { %606 = vmatprep.subr.bf16.mxu0 %v3605_v7  ;;  %3488 = vmatprep.subr.bf16.mxu1 %v3605_v7  ;;  %v3625_v36 = vld [vmem:[%s4322_s15 + $0x20] sm:$0xff]   ;;  %v1119_v37 = vld [vmem:[%s4315_s12 + $0x18] sm:$0xff]   ;;  %v3627_v39 = vld [vmem:[%s4322_s15 + $0x28] sm:$0xff]   ;;  %p4026_p4 = pnand %p4025_p1, %p4259_p3  ;;  %p4031_p2 = scmp.lt.s32.totalorder %s4813_s10, %s4029_s9 }
  0x75   : > { %v1121_v38 = vld [vmem:[%s4315_s12 + $0x20] sm:$0xff]   ;;  %v1123_v40 = vld [vmem:[%s4315_s12 + $0x28] sm:$0xff]   ;;  %v1125_v41 = vld [vmem:[%s4315_s12 + $0x30] sm:$0xff]  }
  0x76   : > { %v3629_v42 = vld [vmem:[%s4322_s15 + $0x30] sm:$0xff]   ;;  %v1127_v43 = vld [vmem:[%s4315_s12 + $0x38] sm:$0xff]   ;;  %v1129_v44 = vld [vmem:[%s4315_s12 + $0x40] sm:$0xff]   ;;  %p4027_p8 = pneg %p4026_p4 }
  0x77   : > { %607 = vmatpush1.bf16.msra.mxu0 %v3607_v8  ;;  %3496 = vmatpush1.bf16.msra.mxu1 %v3607_v8  ;;  %v3631_v45 = vld [vmem:[%s4322_s15 + $0x38] sm:$0xff]   ;;  %v1131_v46 = vld [vmem:[%s4315_s12 + $0x48] sm:$0xff]   ;;  %v3632_v47 = vld [vmem:[%s4322_s15 + $0x40] sm:$0xff]  }
  0x78   : > { %608 = vmatprep.subr.bf16.mxu0 %v3608_v9  ;;  %3489 = vmatprep.subr.bf16.mxu1 %v3608_v9  ;;  %v3633_v48 = vld [vmem:[%s4322_s15 + $0x48] sm:$0xff]   ;;  %v1133_v49 = vld [vmem:[%s4315_s12 + $0x50] sm:$0xff]   ;;  %v1135_v50 = vld [vmem:[%s4315_s12 + $0x58] sm:$0xff]  }
  0x79   : > { %v3634_v51 = vld [vmem:[%s4322_s15 + $0x50] sm:$0xff]   ;;  %v3635_v52 = vld [vmem:[%s4322_s15 + $0x58] sm:$0xff]   ;;  %v1137_v53 = vld [vmem:[%s4315_s12 + $0x60] sm:$0xff]  }
  0x7a   : > { %v1139_v54 = vld [vmem:[%s4315_s12 + $0x68] sm:$0xff]   ;;  %v1141_v55 = vld [vmem:[%s4315_s12 + $0x70] sm:$0xff]   ;;  %v1143_v56 = vld [vmem:[%s4315_s12 + $0x78] sm:$0xff]  }
  0x7b   : > { %609 = vmatpush1.bf16.msra.mxu0 %v3610_v10  ;;  %3497 = vmatpush1.bf16.msra.mxu1 %v3610_v10  ;;  %v412_v60 = vld [vmem:[%s4867_s5] sm:$0x3] }
  0x7c   : > { %610 = vmatprep.subr.bf16.mxu0 %v3611_v11  ;;  %3490 = vmatprep.subr.bf16.mxu1 %v3611_v11  ;;  %v4389_v1 = vrot.slane %v412_v60, %v420_v61 }
  0x7f   : > { %611 = vmatpush1.bf16.msra.mxu0 %v3613_v12  ;;  %3498 = vmatpush1.bf16.msra.mxu1 %v3613_v12 }
  0x80   : > { %612 = vmatprep.subr.bf16.mxu0 %v3614_v13  ;;  %3491 = vmatprep.subr.bf16.mxu1 %v3614_v13 }
  0x83   : > { %613 = vmatpush1.bf16.msra.mxu0 %v3616_v14  ;;  %3499 = vmatpush1.bf16.msra.mxu1 %v3616_v14 }
  0x84   : > { %614 = vmatprep.subr.bf16.mxu0 %v3617_v15  ;;  %3492 = vmatprep.subr.bf16.mxu1 %v3617_v15 }
  0x87   : > { %615 = vmatpush1.bf16.msra.mxu0 %v3619_v16  ;;  %3500 = vmatpush1.bf16.msra.mxu1 %v3619_v16 }
  0x88   : > { %3437 = vmatprep.subr.bf16.mxu1 %v3636_v17 }
  0x8a   : > { %633 = vmatmul.mubr.bf16.vlgmr.msra.gmra.mxu0 %v3620_v18  ;;  %753 = vmatmul.mubr.bf16.vlgmr.msra.gmra.mxu1 %v3624_v19 }
  0x8b   : > { %642 = vmatprep.mubr.bf16.mxu0 %v4126_v0  ;;  %762 = vmatprep.mubr.bf16.mxu1 %v4126_v0 }
  0x8c   : > { %3438 = vmatpush3.bf16.msra.mxu1 %v3636_v17 }
  0x8d   : > { %3439 = vmatprep.subr.bf16.mxu1 %v3637_v20 }
  0x90   : > { %3440 = vmatpush3.bf16.msra.mxu1 %v3637_v20 }
  0x91   : > { %3441 = vmatprep.subr.bf16.mxu1 %v3638_v21 }
  0x92   : > { %643 = vmatmul.mubr.bf16.gmra.mxu0 %v3621_v22  ;;  %763 = vmatmul.mubr.bf16.gmra.mxu1 %v3626_v23 }
  0x93   : > { %652 = vmatprep.mubr.bf16.mxu0 %v4126_v0  ;;  %772 = vmatprep.mubr.bf16.mxu1 %v4126_v0 }
  0x94   : > { %3442 = vmatpush3.bf16.msra.mxu1 %v3638_v21 }
  0x95   : > { %3443 = vmatprep.subr.bf16.mxu1 %v3639_v24 }
  0x98   : > { %3444 = vmatpush3.bf16.msra.mxu1 %v3639_v24 }
  0x99   : > { %3445 = vmatprep.subr.bf16.mxu1 %v3640_v25 }
  0x9a   : > { %653 = vmatmul.mubr.bf16.gmra.mxu0 %v3622_v26  ;;  %773 = vmatmul.mubr.bf16.gmra.mxu1 %v3628_v27 }
  0x9b   : > { %662 = vmatprep.mubr.bf16.mxu0 %v4126_v0  ;;  %782 = vmatprep.mubr.bf16.mxu1 %v4126_v0 }
  0x9c   : > { %3446 = vmatpush3.bf16.msra.mxu1 %v3640_v25 }
  0x9d   : > { %3447 = vmatprep.subr.bf16.mxu1 %v3641_v28 }
  0xa0   : > { %3448 = vmatpush3.bf16.msra.mxu1 %v3641_v28 }
  0xa1   : > { %3449 = vmatprep.subr.bf16.mxu1 %v3642_v30 }
  0xa2   : > { %663 = vmatmul.mubr.bf16.gmra.mxu0 %v3623_v31  ;;  %783 = vmatmul.mubr.bf16.gmra.mxu1 %v3630_v32 }
  0xa3   : > { %672 = vmatprep.mubr.bf16.mxu0 %v4126_v0  ;;  %3453 = vmatprep.mubr.bf16.mxu1 %v1113_v29 }
  0xa4   : > { %3450 = vmatpush3.bf16.msra.mxu1 %v3642_v30 }
  0xa5   : > { %3451 = vmatprep.subr.bf16.mxu1 %v3643_v33 }
  0xa8   : > { %3452 = vmatpush3.bf16.msra.mxu1 %v3643_v33 }
  0xaa   : > { %673 = vmatmul.mubr.bf16.gmra.mxu0 %v3625_v36 }
  0xab   : > { %682 = vmatprep.mubr.bf16.mxu0 %v4126_v0  ;;  %3454 = vmatmul.mubr.bf16.vlgmr.msra.gmra.mxu1 %v1115_v34 }
  0xac   : > { %3457 = vmatprep.mubr.bf16.mxu1 %v1117_v35 }
  0xb2   : > { %683 = vmatmul.mubr.bf16.gmra.mxu0 %v3627_v39 }
  0xb3   : > { %692 = vmatprep.mubr.bf16.mxu0 %v4126_v0  ;;  %3458 = vmatmul.mubr.bf16.gmra.mxu1 %v1119_v37 }
  0xb4   : > { %3461 = vmatprep.mubr.bf16.mxu1 %v1121_v38 }
  0xba   : > { %693 = vmatmul.mubr.bf16.gmra.mxu0 %v3629_v42 }
  0xbb   : > { %702 = vmatprep.mubr.bf16.mxu0 %v4126_v0  ;;  %3462 = vmatmul.mubr.bf16.gmra.mxu1 %v1123_v40 }
  0xbc   : > { %3465 = vmatprep.mubr.bf16.mxu1 %v1125_v41 }
  0xc2   : > { %703 = vmatmul.mubr.bf16.gmra.mxu0 %v3631_v45 }
  0xc3   : > { %712 = vmatprep.mubr.bf16.mxu0 %v4126_v0  ;;  %3466 = vmatmul.mubr.bf16.gmra.mxu1 %v1127_v43 }
  0xc4   : > { %3469 = vmatprep.mubr.bf16.mxu1 %v1129_v44 }
  0xca   : > { %713 = vmatmul.mubr.bf16.gmra.mxu0 %v3632_v47 }
  0xcb   : > { %722 = vmatprep.mubr.bf16.mxu0 %v4126_v0  ;;  %3470 = vmatmul.mubr.bf16.gmra.mxu1 %v1131_v46 }
  0xcc   : > { %3473 = vmatprep.mubr.bf16.mxu1 %v1133_v49 }
  0xd2   : > { %723 = vmatmul.mubr.bf16.gmra.mxu0 %v3633_v48 }
  0xd3   : > { %732 = vmatprep.mubr.bf16.mxu0 %v4126_v0  ;;  %3474 = vmatmul.mubr.bf16.gmra.mxu1 %v1135_v50 }
  0xd4   : > { %3477 = vmatprep.mubr.bf16.mxu1 %v1137_v53 }
  0xda   : > { %733 = vmatmul.mubr.bf16.gmra.mxu0 %v3634_v51 }
  0xdb   : > { %742 = vmatprep.mubr.bf16.mxu0 %v4126_v0  ;;  %3478 = vmatmul.mubr.bf16.gmra.mxu1 %v1139_v54  ;;  %v4387_v0 = vrot.slane %v412_v60, %v416_v59 }
  0xdc   : > { %3481 = vmatprep.mubr.bf16.mxu1 %v1141_v55 }
  0xe2   : > { %743 = vmatmul.mubr.bf16.gmra.mxu0 %v3635_v52 }
  0xe3   : > { %3482 = vmatmul.mubr.bf16.gmra.mxu1 %v1143_v56 }
 0x14a   : > { %v634_v62 = vpop.f32.mrf.mxu0  ;;  %v754_v63 = vpop.f32.mrf.mxu1 }
 0x14b   : > { %v755_v4 = vadd.f32 %v754_v63, %v4387_v0  ;;  %v635_v7 = vadd.f32 %v634_v62, %v4387_v0 }
 0x14c   : > { %v636_v2 = vpop.f32.mrf.mxu0  ;;  %v756_v3 = vpop.f32.mrf.mxu1 }
 0x14d   : > { %v757_v9 = vadd.f32 %v756_v3, %v4389_v1  ;;  %v637_v11 = vadd.f32 %v636_v2, %v4389_v1 }
 0x14e   : > { %v638_v5 = vpop.f32.mrf.mxu0  ;;  %v758_v6 = vpop.f32.mrf.mxu1 }
 0x14f   : > { %v639_v8 = vadd.f32 %v638_v5, %v4387_v0  ;;  %v759_v10 = vadd.f32 %v758_v6, %v4387_v0 }
 0x150   : > { %v640_v12 = vpop.f32.mrf.mxu0  ;;  %v760_v13 = vpop.f32.mrf.mxu1 }
 0x151   : > { %v3066_v14 = vpack.c.bf16 %v639_v8, %v635_v7  ;;  %v641_v15 = vadd.f32 %v640_v12, %v4389_v1  ;;  %v3126_v16 = vpack.c.bf16 %v759_v10, %v755_v4  ;;  %v761_v17 = vadd.f32 %v760_v13, %v4389_v1 }
 0x152   : > { %v644_v18 = vpop.f32.mrf.mxu0  ;;  %v764_v19 = vpop.f32.mrf.mxu1 }
 0x153   : > { %3067 = vst [vmem:[#allocation2] sm:$0xff] %v3066_v14   ;;  %v3146_v20 = vpack.c.bf16 %v641_v15, %v637_v11  ;;  %3234 = vst [vmem:[#allocation2 + $0x60] sm:$0xff] %v3126_v16   ;;  %v3206_v21 = vpack.c.bf16 %v761_v17, %v757_v9  ;;  %v765_v24 = vadd.f32 %v764_v19, %v4387_v0 }
 0x154   : > { %v646_v22 = vpop.f32.mrf.mxu0  ;;  %v766_v23 = vpop.f32.mrf.mxu1  ;;  %v645_v27 = vadd.f32 %v644_v18, %v4387_v0 }
 0x155   : > { %3147 = vst [vmem:[#allocation3] sm:$0xff] %v3146_v20   ;;  %3249 = vst [vmem:[#allocation3 + $0x60] sm:$0xff] %v3206_v21   ;;  %v767_v29 = vadd.f32 %v766_v23, %v4389_v1  ;;  %v647_v31 = vadd.f32 %v646_v22, %v4389_v1  ;;  %v4426_v20 = vld [vmem:[%s4865_s3] ss:$0 sm:$0xff] }
 0x156   : > { %v648_v25 = vpop.f32.mrf.mxu0  ;;  %v768_v26 = vpop.f32.mrf.mxu1 }
 0x157   : > { %v649_v28 = vadd.f32 %v648_v25, %v4387_v0  ;;  %v769_v30 = vadd.f32 %v768_v26, %v4387_v0 }
 0x158   : > { %v650_v32 = vpop.f32.mrf.mxu0  ;;  %v770_v33 = vpop.f32.mrf.mxu1 }
 0x159   : > { %v3071_v34 = vpack.c.bf16 %v649_v28, %v645_v27  ;;  %v651_v35 = vadd.f32 %v650_v32, %v4389_v1  ;;  %v3131_v36 = vpack.c.bf16 %v769_v30, %v765_v24  ;;  %v771_v37 = vadd.f32 %v770_v33, %v4389_v1 }
 0x15a   : > { %v654_v38 = vpop.f32.mrf.mxu0  ;;  %v774_v39 = vpop.f32.mrf.mxu1 }
 0x15b   : > { %3223 = vst [vmem:[#allocation2 + $0x8] sm:$0xff] %v3071_v34   ;;  %v3151_v40 = vpack.c.bf16 %v651_v35, %v647_v31  ;;  %3235 = vst [vmem:[#allocation2 + $0x68] sm:$0xff] %v3131_v36   ;;  %v3211_v41 = vpack.c.bf16 %v771_v37, %v767_v29  ;;  %v775_v44 = vadd.f32 %v774_v39, %v4387_v0 }
 0x15c   : > { %v656_v42 = vpop.f32.mrf.mxu0  ;;  %v776_v43 = vpop.f32.mrf.mxu1  ;;  %v655_v47 = vadd.f32 %v654_v38, %v4387_v0 }
 0x15d   : > { %3238 = vst [vmem:[#allocation3 + $0x8] sm:$0xff] %v3151_v40   ;;  %3250 = vst [vmem:[#allocation3 + $0x68] sm:$0xff] %v3211_v41   ;;  %v777_v49 = vadd.f32 %v776_v43, %v4389_v1  ;;  %v657_v51 = vadd.f32 %v656_v42, %v4389_v1 }
 0x15e   : > { %v658_v45 = vpop.f32.mrf.mxu0  ;;  %v778_v46 = vpop.f32.mrf.mxu1 }
 0x15f   : > { %v659_v48 = vadd.f32 %v658_v45, %v4387_v0  ;;  %v779_v50 = vadd.f32 %v778_v46, %v4387_v0 }
 0x160   : > { %v660_v52 = vpop.f32.mrf.mxu0  ;;  %v780_v53 = vpop.f32.mrf.mxu1 }
 0x161   : > { %v3076_v54 = vpack.c.bf16 %v659_v48, %v655_v47  ;;  %v661_v55 = vadd.f32 %v660_v52, %v4389_v1  ;;  %v3136_v56 = vpack.c.bf16 %v779_v50, %v775_v44  ;;  %v781_v57 = vadd.f32 %v780_v53, %v4389_v1 }
 0x162   : > { %v664_v58 = vpop.f32.mrf.mxu0  ;;  %v784_v59 = vpop.f32.mrf.mxu1 }
 0x163   : > { %3224 = vst [vmem:[#allocation2 + $0x10] sm:$0xff] %v3076_v54   ;;  %v3156_v60 = vpack.c.bf16 %v661_v55, %v657_v51  ;;  %3236 = vst [vmem:[#allocation2 + $0x70] sm:$0xff] %v3136_v56   ;;  %v3216_v61 = vpack.c.bf16 %v781_v57, %v777_v49  ;;  %v785_v2 = vadd.f32 %v784_v59, %v4387_v0 }
 0x164   : > { %v666_v62 = vpop.f32.mrf.mxu0  ;;  %v786_v63 = vpop.f32.mrf.mxu1  ;;  %v665_v5 = vadd.f32 %v664_v58, %v4387_v0 }
 0x165   : > { %3239 = vst [vmem:[#allocation3 + $0x10] sm:$0xff] %v3156_v60   ;;  %3251 = vst [vmem:[#allocation3 + $0x70] sm:$0xff] %v3216_v61   ;;  %v787_v7 = vadd.f32 %v786_v63, %v4389_v1  ;;  %v667_v9 = vadd.f32 %v666_v62, %v4389_v1 }
 0x166   : > { %v668_v3 = vpop.f32.mrf.mxu0  ;;  %v788_v4 = vpop.f32.mrf.mxu1 }
 0x167   : > { %v669_v6 = vadd.f32 %v668_v3, %v4387_v0  ;;  %v789_v8 = vadd.f32 %v788_v4, %v4387_v0 }
 0x168   : > { %v670_v10 = vpop.f32.mrf.mxu0  ;;  %v790_v11 = vpop.f32.mrf.mxu1 }
 0x169   : > { %v3081_v12 = vpack.c.bf16 %v669_v6, %v665_v5  ;;  %v671_v13 = vadd.f32 %v670_v10, %v4389_v1  ;;  %v3141_v14 = vpack.c.bf16 %v789_v8, %v785_v2  ;;  %v791_v15 = vadd.f32 %v790_v11, %v4389_v1 }
 0x16a   : > { %v674_v16 = vpop.f32.mrf.mxu0 }
 0x16b   : > { %3225 = vst [vmem:[#allocation2 + $0x18] sm:$0xff] %v3081_v12   ;;  %v3161_v17 = vpack.c.bf16 %v671_v13, %v667_v9  ;;  %3237 = vst [vmem:[#allocation2 + $0x78] sm:$0xff] %v3141_v14   ;;  %v3221_v18 = vpack.c.bf16 %v791_v15, %v787_v7  ;;  %v3455_v19 = vpop.f32.mrf.mxu1  ;;  %v675_v25 = vadd.f32 %v674_v16, %v4387_v0 }
 0x16c   : > { %v676_v21 = vpop.f32.mrf.mxu0  ;;  %v1355_v24 = vadd.f32 %v3455_v19, %v4426_v20 }
 0x16d   : > { %3240 = vst [vmem:[#allocation3 + $0x18] sm:$0xff] %v3161_v17   ;;  %3252 = vst [vmem:[#allocation3 + $0x78] sm:$0xff] %v3221_v18   ;;  %v1346_v22 = vpop.f32.mrf.mxu1  ;;  %v677_v31 = vadd.f32 %v676_v21, %v4389_v1 }
 0x16e   : > { %v678_v23 = vpop.f32.mrf.mxu0  ;;  %v1347_v29 = vadd.f32 %v4426_v20, %v1346_v22  ;;  %v3663_v22 = vld [vmem:[#allocation2 + $0x70] sm:$0xff]  }
 0x16f   : > { %v679_v26 = vadd.f32 %v678_v23, %v4387_v0  ;;  %v3456_v27 = vpop.f32.mrf.mxu1 }
 0x170   : > { %v680_v28 = vpop.f32.mrf.mxu0  ;;  %v1358_v30 = vadd.f32 %v3456_v27, %v4426_v20 }
 0x171   : > { %v3086_v32 = vpack.c.bf16 %v679_v26, %v675_v25  ;;  %v681_v33 = vadd.f32 %v680_v28, %v4389_v1  ;;  %v1349_v34 = vpop.f32.mrf.mxu1  ;;  %v3665_v25 = vld [vmem:[#allocation3 + $0x70] sm:$0xff]  }
 0x172   : > { %v684_v35 = vpop.f32.mrf.mxu0  ;;  %v3660_v36 = vld [vmem:[#allocation2 + $0x78] sm:$0xff]   ;;  %v4435_v37 = vpack.c.bf16 %v1358_v30, %v1355_v24  ;;  %v1350_v38 = vadd.f32 %v4426_v20, %v1349_v34  ;;  %v3667_v34 = vld [vmem:[#allocation3 + $0x68] sm:$0xff]  }
 0x173   : > { %3226 = vst [vmem:[#allocation2 + $0x20] sm:$0xff] %v3086_v32   ;;  %v3166_v39 = vpack.c.bf16 %v681_v33, %v677_v31  ;;  %3277 = vmatprep.subr.bf16.mxu1 %v3660_v36  ;;  %v685_v44 = vadd.f32 %v684_v35, %v4387_v0 }
 0x174   : > { %v686_v40 = vpop.f32.mrf.mxu0  ;;  %v3661_v41 = vld [vmem:[#allocation3 + $0x78] sm:$0xff]   ;;  %v4438_v42 = vpack.c.bf16 %v1350_v38, %v1347_v29 }
 0x175   : > { %3241 = vst [vmem:[#allocation3 + $0x20] sm:$0xff] %v3166_v39   ;;  %3325 = vmatprep.subr.bf16.mxu0 %v3661_v41  ;;  %v687_v47 = vadd.f32 %v686_v40, %v4389_v1  ;;  %v3669_v39 = vld [vmem:[#allocation2 + $0x68] sm:$0xff]  }
 0x176   : > { %v688_v43 = vpop.f32.mrf.mxu0  ;;  %3293 = vmatprep.mubr.bf16.mxu1 %v4438_v42 }
 0x177   : > { %v689_v45 = vadd.f32 %v688_v43, %v4387_v0  ;;  %v3671_v43 = vld [vmem:[#allocation3 + $0x60] sm:$0xff]  }
 0x178   : > { %v690_v46 = vpop.f32.mrf.mxu0 }
 0x179   : > { %v3091_v48 = vpack.c.bf16 %v689_v45, %v685_v44  ;;  %v691_v49 = vadd.f32 %v690_v46, %v4389_v1 }
 0x17a   : > { %v694_v50 = vpop.f32.mrf.mxu0 }
 0x17b   : > { %3227 = vst [vmem:[#allocation2 + $0x28] sm:$0xff] %v3091_v48   ;;  %v3171_v51 = vpack.c.bf16 %v691_v49, %v687_v47  ;;  %v695_v54 = vadd.f32 %v694_v50, %v4387_v0 }
 0x17c   : > { %v696_v52 = vpop.f32.mrf.mxu0  ;;  %v3672_v48 = vld [vmem:[#allocation3 + $0x20] sm:$0xff]  }
 0x17d   : > { %3242 = vst [vmem:[#allocation3 + $0x28] sm:$0xff] %v3171_v51   ;;  %v697_v57 = vadd.f32 %v696_v52, %v4389_v1 }
 0x17e   : > { %v698_v53 = vpop.f32.mrf.mxu0 }
 0x17f   : > { %v699_v55 = vadd.f32 %v698_v53, %v4387_v0 }
 0x180   : > { %v700_v56 = vpop.f32.mrf.mxu0 }
 0x181   : > { %v3096_v58 = vpack.c.bf16 %v699_v55, %v695_v54  ;;  %v701_v59 = vadd.f32 %v700_v56, %v4389_v1  ;;  %v3674_v55 = vld [vmem:[#allocation2 + $0x60] sm:$0xff]  }
 0x182   : > { %v704_v60 = vpop.f32.mrf.mxu0  ;;  %v3673_v53 = vld [vmem:[#allocation2 + $0x28] sm:$0xff]  }
 0x183   : > { %3228 = vst [vmem:[#allocation2 + $0x30] sm:$0xff] %v3096_v58   ;;  %v3176_v61 = vpack.c.bf16 %v701_v59, %v697_v57  ;;  %v705_v2 = vadd.f32 %v704_v60, %v4387_v0 }
 0x184   : > { %v706_v62 = vpop.f32.mrf.mxu0  ;;  %v3670_v41 = vld [vmem:[#allocation3 + $0x28] sm:$0xff]  }
 0x185   : > { %3243 = vst [vmem:[#allocation3 + $0x30] sm:$0xff] %v3176_v61   ;;  %v707_v5 = vadd.f32 %v706_v62, %v4389_v1 }
 0x186   : > { %v708_v63 = vpop.f32.mrf.mxu0 }
 0x187   : > { %v709_v3 = vadd.f32 %v708_v63, %v4387_v0 }
 0x188   : > { %v710_v4 = vpop.f32.mrf.mxu0 }
 0x189   : > { %v3101_v6 = vpack.c.bf16 %v709_v3, %v705_v2  ;;  %v711_v7 = vadd.f32 %v710_v4, %v4389_v1  ;;  %v3675_v2 = vld [vmem:[#allocation2 + $0x20] sm:$0xff]  }
 0x18a   : > { %v714_v8 = vpop.f32.mrf.mxu0  ;;  %v3668_v36 = vld [vmem:[#allocation2 + $0x30] sm:$0xff]  }
 0x18b   : > { %3229 = vst [vmem:[#allocation2 + $0x38] sm:$0xff] %v3101_v6   ;;  %v3181_v9 = vpack.c.bf16 %v711_v7, %v707_v5  ;;  %v715_v12 = vadd.f32 %v714_v8, %v4387_v0  ;;  %v3677_v5 = vld [vmem:[#allocation2 + $0x18] sm:$0xff]  }
 0x18c   : > { %v716_v10 = vpop.f32.mrf.mxu0  ;;  %v3666_v30 = vld [vmem:[#allocation3 + $0x30] sm:$0xff]   ;;  %v3680_v8 = vld [vmem:[#allocation3 + $0x18] sm:$0xff]  }
 0x18d   : > { %3244 = vst [vmem:[#allocation3 + $0x38] sm:$0xff] %v3181_v9   ;;  %v717_v15 = vadd.f32 %v716_v10, %v4389_v1  ;;  %v3682_v9 = vld [vmem:[#allocation3 + $0x10] sm:$0xff]  }
 0x18e   : > { %v718_v11 = vpop.f32.mrf.mxu0 }
 0x18f   : > { %v719_v13 = vadd.f32 %v718_v11, %v4387_v0 }
 0x190   : > { %v720_v14 = vpop.f32.mrf.mxu0 }
 0x191   : > { %v3106_v16 = vpack.c.bf16 %v719_v13, %v715_v12  ;;  %v721_v17 = vadd.f32 %v720_v14, %v4389_v1  ;;  %v3686_v12 = vld [vmem:[#allocation3 + $0x8] sm:$0xff]   ;;  %v3688_v14 = vld [vmem:[#allocation3] sm:$0xff]  }
 0x192   : > { %v724_v18 = vpop.f32.mrf.mxu0  ;;  %v3662_v19 = vld [vmem:[#allocation2 + $0x38] sm:$0xff]  }
 0x193   : > { %3230 = vst [vmem:[#allocation2 + $0x40] sm:$0xff] %v3106_v16   ;;  %v3186_v21 = vpack.c.bf16 %v721_v17, %v717_v15  ;;  %3278 = vmatpush3.bf16.xpose.msra.mxu1 %v3662_v19  ;;  %v725_v27 = vadd.f32 %v724_v18, %v4387_v0  ;;  %v3689_v15 = vld [vmem:[#allocation2 + $0x8] sm:$0xff]   ;;  %v3459_v17 = vpop.f32.mrf.mxu1  ;;  %v3691_v19 = vld [vmem:[#allocation2] sm:$0xff]  }
 0x194   : > { %v726_v23 = vpop.f32.mrf.mxu0  ;;  %v3664_v24 = vld [vmem:[#allocation3 + $0x38] sm:$0xff]   ;;  %3279 = vmatprep.subr.bf16.mxu1 %v3663_v22 }
 0x195   : > { %3245 = vst [vmem:[#allocation3 + $0x40] sm:$0xff] %v3186_v21   ;;  %3326 = vmatpush3.bf16.msra.mxu0 %v3664_v24  ;;  %v727_v31 = vadd.f32 %v726_v23, %v4389_v1  ;;  %v1362_v18 = vpop.f32.mrf.mxu1 }
 0x196   : > { %v728_v26 = vpop.f32.mrf.mxu0  ;;  %3327 = vmatprep.subr.bf16.mxu0 %v3665_v25  ;;  %v1363_v23 = vadd.f32 %v4426_v20, %v1362_v18 }
 0x197   : > { %v729_v28 = vadd.f32 %v728_v26, %v4387_v0  ;;  %v3460_v21 = vpop.f32.mrf.mxu1 }
 0x198   : > { %v730_v29 = vpop.f32.mrf.mxu0 }
 0x199   : > { %v3111_v32 = vpack.c.bf16 %v729_v28, %v725_v27  ;;  %v731_v33 = vadd.f32 %v730_v29, %v4389_v1  ;;  %3328 = vmatpush3.bf16.msra.mxu0 %v3666_v30  ;;  %v1365_v22 = vpop.f32.mrf.mxu1  ;;  %v1371_v29 = vadd.f32 %v3459_v17, %v4426_v20  ;;  %v1374_v30 = vadd.f32 %v3460_v21, %v4426_v20 }
 0x19a   : > { %v734_v35 = vpop.f32.mrf.mxu0  ;;  %3329 = vmatprep.subr.bf16.mxu0 %v3667_v34  ;;  %v3690_v16 = vld [vmem:[#allocation2 + $0x40] sm:$0xff]   ;;  %v1366_v24 = vadd.f32 %v4426_v20, %v1365_v22 }
 0x19b   : > { %3231 = vst [vmem:[#allocation2 + $0x48] sm:$0xff] %v3111_v32   ;;  %v3191_v38 = vpack.c.bf16 %v731_v33, %v727_v31  ;;  %3280 = vmatpush3.bf16.xpose.msra.mxu1 %v3668_v36  ;;  %v735_v45 = vadd.f32 %v734_v35, %v4387_v0  ;;  %v3463_v25 = vpop.f32.mrf.mxu1  ;;  %v1476_v32 = vpack.c.bf16 %v1374_v30, %v1371_v29 }
 0x19c   : > { %v736_v40 = vpop.f32.mrf.mxu0  ;;  %3281 = vmatprep.subr.bf16.mxu1 %v3669_v39  ;;  %v3687_v13 = vld [vmem:[#allocation3 + $0x40] sm:$0xff]   ;;  %v1475_v26 = vpack.c.bf16 %v1366_v24, %v1363_v23 }
 0x19d   : > { %3246 = vst [vmem:[#allocation3 + $0x48] sm:$0xff] %v3191_v38   ;;  %3330 = vmatpush3.bf16.msra.mxu0 %v3670_v41  ;;  %v737_v49 = vadd.f32 %v736_v40, %v4389_v1  ;;  %v1378_v27 = vpop.f32.mrf.mxu1  ;;  %v1387_v38 = vadd.f32 %v3463_v25, %v4426_v20 }
 0x19e   : > { %v738_v44 = vpop.f32.mrf.mxu0  ;;  %3331 = vmatprep.subr.bf16.mxu0 %v3671_v43 }
 0x19f   : > { %v739_v46 = vadd.f32 %v738_v44, %v4387_v0  ;;  %v3464_v28 = vpop.f32.mrf.mxu1 }
 0x1a0   : > { %v740_v47 = vpop.f32.mrf.mxu0  ;;  %v1390_v39 = vadd.f32 %v3464_v28, %v4426_v20 }
 0x1a1   : > { %v3116_v50 = vpack.c.bf16 %v739_v46, %v735_v45  ;;  %v741_v51 = vadd.f32 %v740_v47, %v4389_v1  ;;  %3332 = vmatpush3.bf16.msra.mxu0 %v3672_v48  ;;  %v1381_v31 = vpop.f32.mrf.mxu1 }
 0x1a2   : > { %v744_v52 = vpop.f32.mrf.mxu0  ;;  %v3685_v11 = vld [vmem:[#allocation2 + $0x48] sm:$0xff]   ;;  %v1382_v33 = vadd.f32 %v4426_v20, %v1381_v31  ;;  %v1478_v41 = vpack.c.bf16 %v1390_v39, %v1387_v38 }
 0x1a3   : > { %3232 = vst [vmem:[#allocation2 + $0x50] sm:$0xff] %v3116_v50   ;;  %v3196_v54 = vpack.c.bf16 %v741_v51, %v737_v49  ;;  %3282 = vmatpush3.bf16.xpose.msra.mxu1 %v3673_v53  ;;  %v745_v58 = vadd.f32 %v744_v52, %v4387_v0  ;;  %v3467_v34 = vpop.f32.mrf.mxu1 }
 0x1a4   : > { %v746_v56 = vpop.f32.mrf.mxu0  ;;  %3283 = vmatprep.subr.bf16.mxu1 %v3674_v55  ;;  %v3683_v10 = vld [vmem:[#allocation3 + $0x48] sm:$0xff]   ;;  %v1403_v49 = vadd.f32 %v3467_v34, %v4426_v20 }
 0x1a5   : > { %3247 = vst [vmem:[#allocation3 + $0x50] sm:$0xff] %v3196_v54   ;;  %v747_v61 = vadd.f32 %v746_v56, %v4389_v1  ;;  %v1394_v36 = vpop.f32.mrf.mxu1 }
 0x1a6   : > { %v748_v57 = vpop.f32.mrf.mxu0  ;;  %v1395_v43 = vadd.f32 %v4426_v20, %v1394_v36 }
 0x1a7   : > { %v749_v59 = vadd.f32 %v748_v57, %v4387_v0 }
 0x1a8   : > { %v750_v60 = vpop.f32.mrf.mxu0 }
 0x1a9   : > { %v3121_v62 = vpack.c.bf16 %v749_v59, %v745_v58  ;;  %v751_v63 = vadd.f32 %v750_v60, %v4389_v1  ;;  %v3684_v1 = vld [vmem:[#allocation2 + $0x10] sm:$0xff]  }
 0x1aa   : > { %v3678_v6 = vld [vmem:[#allocation2 + $0x50] sm:$0xff]  }
 0x1ab   : > { %3233 = vst [vmem:[#allocation2 + $0x58] sm:$0xff] %v3121_v62   ;;  %v3201_v3 = vpack.c.bf16 %v751_v63, %v747_v61  ;;  %3284 = vmatpush3.bf16.xpose.msra.mxu1 %v3675_v2 }
 0x1ac   : > { %v3681_v0 = vld [vmem:[#allocation3 + $0x50] sm:$0xff]  }
 0x1ad   : > { %3248 = vst [vmem:[#allocation3 + $0x58] sm:$0xff] %v3201_v3  }
 0x1b2   : > { %v3676_v4 = vld [vmem:[#allocation2 + $0x58] sm:$0xff]  }
 0x1b3   : > { %3285 = vmatprep.subr.bf16.mxu1 %v3676_v4 }
 0x1b4   : > { %v3679_v7 = vld [vmem:[#allocation3 + $0x58] sm:$0xff]   ;;  %3286 = vmatpush3.bf16.xpose.msra.mxu1 %v3677_v5 }
 0x1b5   : > { %3287 = vmatprep.subr.bf16.mxu1 %v3678_v6  ;;  %3333 = vmatprep.subr.bf16.mxu0 %v3679_v7 }
 0x1b6   : > { %3334 = vmatpush3.bf16.msra.mxu0 %v3680_v8 }
 0x1b7   : > { %3335 = vmatprep.subr.bf16.mxu0 %v3681_v0 }
 0x1ba   : > { %3336 = vmatpush3.bf16.msra.mxu0 %v3682_v9 }
 0x1bb   : > { %3337 = vmatprep.subr.bf16.mxu0 %v3683_v10 }
 0x1bc   : > { %3288 = vmatpush3.bf16.xpose.msra.mxu1 %v3684_v1 }
 0x1bd   : > { %3289 = vmatprep.subr.bf16.mxu1 %v3685_v11 }
 0x1be   : > { %3338 = vmatpush3.bf16.msra.mxu0 %v3686_v12 }
 0x1bf   : > { %3339 = vmatprep.subr.bf16.mxu0 %v3687_v13 }
 0x1c2   : > { %3340 = vmatpush3.bf16.msra.mxu0 %v3688_v14 }
 0x1c4   : > { %3290 = vmatpush3.bf16.xpose.msra.mxu1 %v3689_v15 }
 0x1c5   : > { %3291 = vmatprep.subr.bf16.mxu1 %v3690_v16 }
 0x1cc   : > { %3292 = vmatpush3.bf16.xpose.msra.mxu1 %v3691_v19 }
 0x1d3   : > { %3294 = vmatmul.mubr.bf16.vlgmr.msra.gmra.mxu1 %v4438_v42  ;;  %v1379_v42 = vadd.f32 %v4426_v20, %v1378_v27 }
 0x1d4   : > { %3295 = vmatprep.mubr.bf16.mxu1 %v4435_v37 }
 0x1d5   : > { %v1477_v35 = vpack.c.bf16 %v1382_v33, %v1379_v42 }
 0x1db   : > { %3296 = vmatmul.mubr.bf16.gmra.mxu1 %v4435_v37  ;;  %v3468_v37 = vpop.f32.mrf.mxu1 }
 0x1dc   : > { %3297 = vmatprep.mubr.bf16.mxu1 %v1475_v26  ;;  %v1406_v50 = vadd.f32 %v3468_v37, %v4426_v20 }
 0x1dd   : > { %v1397_v40 = vpop.f32.mrf.mxu1 }
 0x1de   : > { %v1398_v44 = vadd.f32 %v4426_v20, %v1397_v40  ;;  %v1480_v52 = vpack.c.bf16 %v1406_v50, %v1403_v49 }
 0x1df   : > { %v3471_v45 = vpop.f32.mrf.mxu1 }
 0x1e0   : > { %v1479_v46 = vpack.c.bf16 %v1398_v44, %v1395_v43  ;;  %v1419_v59 = vadd.f32 %v3471_v45, %v4426_v20 }
 0x1e1   : > { %v1410_v47 = vpop.f32.mrf.mxu1 }
 0x1e2   : > { %v1411_v53 = vadd.f32 %v4426_v20, %v1410_v47 }
 0x1e3   : > { %3298 = vmatmul.mubr.bf16.gmra.mxu1 %v1475_v26  ;;  %v3472_v48 = vpop.f32.mrf.mxu1 }
 0x1e4   : > { %3299 = vmatprep.mubr.bf16.mxu1 %v1476_v32  ;;  %v1422_v60 = vadd.f32 %v3472_v48, %v4426_v20 }
 0x1e5   : > { %v1413_v51 = vpop.f32.mrf.mxu1 }
 0x1e6   : > { %v1414_v54 = vadd.f32 %v4426_v20, %v1413_v51  ;;  %v1482_v62 = vpack.c.bf16 %v1422_v60, %v1419_v59 }
 0x1e7   : > { %v3475_v55 = vpop.f32.mrf.mxu1 }
 0x1e8   : > { %v1481_v56 = vpack.c.bf16 %v1414_v54, %v1411_v53  ;;  %v1435_v7 = vadd.f32 %v3475_v55, %v4426_v20 }
 0x1e9   : > { %v1426_v57 = vpop.f32.mrf.mxu1 }
 0x1ea   : > { %v1427_v63 = vadd.f32 %v4426_v20, %v1426_v57 }
 0x1eb   : > { %3300 = vmatmul.mubr.bf16.gmra.mxu1 %v1476_v32  ;;  %v3476_v58 = vpop.f32.mrf.mxu1 }
 0x1ec   : > { %3301 = vmatprep.mubr.bf16.mxu1 %v1477_v35  ;;  %v1438_v8 = vadd.f32 %v3476_v58, %v4426_v20 }
 0x1ed   : > { %v1429_v61 = vpop.f32.mrf.mxu1 }
 0x1ee   : > { %v1430_v2 = vadd.f32 %v4426_v20, %v1429_v61  ;;  %v1484_v9 = vpack.c.bf16 %v1438_v8, %v1435_v7 }
 0x1ef   : > { %v3479_v3 = vpop.f32.mrf.mxu1 }
 0x1f0   : > { %v1483_v4 = vpack.c.bf16 %v1430_v2, %v1427_v63  ;;  %v1451_v15 = vadd.f32 %v3479_v3, %v4426_v20 }
 0x1f1   : > { %v1442_v5 = vpop.f32.mrf.mxu1 }
 0x1f2   : > { %v1443_v10 = vadd.f32 %v4426_v20, %v1442_v5 }
 0x1f3   : > { %3302 = vmatmul.mubr.bf16.gmra.mxu1 %v1477_v35  ;;  %v3480_v6 = vpop.f32.mrf.mxu1 }
 0x1f4   : > { %3303 = vmatprep.mubr.bf16.mxu1 %v1478_v41  ;;  %v1454_v16 = vadd.f32 %v3480_v6, %v4426_v20 }
 0x1f5   : > { %v1445_v0 = vpop.f32.mrf.mxu1 }
 0x1f6   : > { %v1446_v1 = vadd.f32 %v4426_v20, %v1445_v0  ;;  %v1486_v18 = vpack.c.bf16 %v1454_v16, %v1451_v15 }
 0x1f7   : > { %v3483_v11 = vpop.f32.mrf.mxu1 }
 0x1f8   : > { %v1485_v12 = vpack.c.bf16 %v1446_v1, %v1443_v10  ;;  %v1467_v23 = vadd.f32 %v3483_v11, %v4426_v20 }
 0x1f9   : > { %v1458_v13 = vpop.f32.mrf.mxu1 }
 0x1fa   : > { %v1459_v19 = vadd.f32 %v4426_v20, %v1458_v13 }
 0x1fb   : > { %3304 = vmatmul.mubr.bf16.gmra.mxu1 %v1478_v41  ;;  %v3484_v14 = vpop.f32.mrf.mxu1 }
 0x1fc   : > { %3305 = vmatprep.mubr.bf16.mxu1 %v1479_v46  ;;  %v1470_v24 = vadd.f32 %v3484_v14, %v4426_v20 }
 0x1fd   : > { %v1461_v17 = vpop.f32.mrf.mxu1 }
 0x1fe   : > { %v1462_v21 = vadd.f32 %v4426_v20, %v1461_v17  ;;  %v1488_v25 = vpack.c.bf16 %v1470_v24, %v1467_v23 }
 0x200   : > { %v1487_v22 = vpack.c.bf16 %v1462_v21, %v1459_v19 }
 0x203   : > { %3306 = vmatmul.mubr.bf16.gmra.mxu1 %v1479_v46 }
 0x204   : > { %3307 = vmatprep.mubr.bf16.mxu1 %v1480_v52 }
 0x20b   : > { %3308 = vmatmul.mubr.bf16.gmra.mxu1 %v1480_v52 }
 0x20c   : > { %3309 = vmatprep.mubr.bf16.mxu1 %v1481_v56 }
 0x213   : > { %3310 = vmatmul.mubr.bf16.gmra.mxu1 %v1481_v56 }
 0x214   : > { %3311 = vmatprep.mubr.bf16.mxu1 %v1482_v62 }
 0x21b   : > { %3312 = vmatmul.mubr.bf16.gmra.mxu1 %v1482_v62 }
 0x21c   : > { %3313 = vmatprep.mubr.bf16.mxu1 %v1483_v4 }
 0x223   : > { %3314 = vmatmul.mubr.bf16.gmra.mxu1 %v1483_v4 }
 0x224   : > { %3315 = vmatprep.mubr.bf16.mxu1 %v1484_v9 }
 0x22b   : > { %3316 = vmatmul.mubr.bf16.gmra.mxu1 %v1484_v9 }
 0x22c   : > { %3317 = vmatprep.mubr.bf16.mxu1 %v1485_v12 }
 0x233   : > { %3318 = vmatmul.mubr.bf16.gmra.mxu1 %v1485_v12 }
 0x234   : > { %3319 = vmatprep.mubr.bf16.mxu1 %v1486_v18 }
 0x23b   : > { %3320 = vmatmul.mubr.bf16.gmra.mxu1 %v1486_v18 }
 0x23c   : > { %3321 = vmatprep.mubr.bf16.mxu1 %v1487_v22 }
 0x243   : > { %3322 = vmatmul.mubr.bf16.gmra.mxu1 %v1487_v22 }
 0x244   : > { %3323 = vmatprep.mubr.bf16.mxu1 %v1488_v25 }
 0x24b   : > { %3324 = vmatmul.mubr.bf16.gmra.mxu1 %v1488_v25 }
 0x293   : > { %v4500_v26 = vpop.f32.mrf.mxu1 }
 0x295   : > { %v4502_v27 = vpop.f32.mrf.mxu1 }
 0x296   : > { %v1810_v28 = vmax.f32 %v4500_v26, %v4502_v27 }
 0x297   : > { %v4506_v29 = vpop.f32.mrf.mxu1 }
 0x298   : > { %1811 = vmax.xlane.f32.xlu0 %v1810_v28 }
 0x299   : > { %v4508_v30 = vpop.f32.mrf.mxu1 }
 0x29a   : > { %v1813_v31 = vmax.f32 %v4506_v29, %v4508_v30 }
 0x29b   : > { %v4512_v20 = vpop.f32.mrf.mxu1 }
 0x29c   : > { %1814 = vmax.xlane.f32.xlu0 %v1813_v31 }
 0x29d   : > { %v4514_v32 = vpop.f32.mrf.mxu1 }
 0x29e   : > { %v1816_v42 = vmax.f32 %v4512_v20, %v4514_v32 }
 0x29f   : > { %v4518_v33 = vpop.f32.mrf.mxu1 }
 0x2a0   : > { %1817 = vmax.xlane.f32.xlu1 %v1816_v42 }
 0x2a1   : > { %v4520_v34 = vpop.f32.mrf.mxu1 }
 0x2a2   : > { %v1819_v35 = vmax.f32 %v4518_v33, %v4520_v34 }
 0x2a3   : > { %v4524_v36 = vpop.f32.mrf.mxu1 }
 0x2a4   : > { %1820 = vmax.xlane.f32.xlu1 %v1819_v35 }
 0x2a5   : > { %v4526_v37 = vpop.f32.mrf.mxu1 }
 0x2a6   : > { %v1822_v38 = vmax.f32 %v4524_v36, %v4526_v37 }
 0x2a7   : > { %v4530_v39 = vpop.f32.mrf.mxu1 }
 0x2a8   : > { %1823 = vmax.xlane.f32.xlu0 %v1822_v38 }
 0x2a9   : > { %v4532_v40 = vpop.f32.mrf.mxu1 }
 0x2aa   : > { %v1825_v41 = vmax.f32 %v4530_v39, %v4532_v40 }
 0x2ab   : > { %v4536_v43 = vpop.f32.mrf.mxu1 }
 0x2ac   : > { %1826 = vmax.xlane.f32.xlu1 %v1825_v41 }
 0x2ad   : > { %v4538_v44 = vpop.f32.mrf.mxu1 }
 0x2ae   : > { %v1828_v45 = vmax.f32 %v4536_v43, %v4538_v44 }
 0x2af   : > { %v4542_v46 = vpop.f32.mrf.mxu1 }
 0x2b0   : > { %1829 = vmax.xlane.f32.xlu0 %v1828_v45 }
 0x2b1   : > { %v4544_v47 = vpop.f32.mrf.mxu1 }
 0x2b2   : > { %v1831_v48 = vmax.f32 %v4542_v46, %v4544_v47 }
 0x2b3   : > { %v4548_v49 = vpop.f32.mrf.mxu1 }
 0x2b4   : > { %1832 = vmax.xlane.f32.xlu1 %v1831_v48 }
 0x2b5   : > { %v4550_v50 = vpop.f32.mrf.mxu1 }
 0x2b6   : > { %v1834_v51 = vmax.f32 %v4548_v49, %v4550_v50 }
 0x2b7   : > { %v4554_v52 = vpop.f32.mrf.mxu1 }
 0x2b8   : > { %1835 = vmax.xlane.f32.xlu0 %v1834_v51 }
 0x2b9   : > { %v4556_v53 = vpop.f32.mrf.mxu1 }
 0x2ba   : > { %v1837_v54 = vmax.f32 %v4554_v52, %v4556_v53 }
 0x2bb   : > { %v4560_v55 = vpop.f32.mrf.mxu1 }
 0x2bc   : > { %1838 = vmax.xlane.f32.xlu1 %v1837_v54 }
 0x2bd   : > { %v4562_v56 = vpop.f32.mrf.mxu1 }
 0x2be   : > { %v1840_v57 = vmax.f32 %v4560_v55, %v4562_v56 }
 0x2bf   : > { %v4566_v58 = vpop.f32.mrf.mxu1 }
 0x2c0   : > { %1841 = vmax.xlane.f32.xlu0 %v1840_v57 }
 0x2c1   : > { %v4568_v59 = vpop.f32.mrf.mxu1 }
 0x2c2   : > { %v1843_v60 = vmax.f32 %v4566_v58, %v4568_v59 }
 0x2c3   : > { %v4572_v61 = vpop.f32.mrf.mxu1 }
 0x2c4   : > { %1844 = vmax.xlane.f32.xlu1 %v1843_v60 }
 0x2c5   : > { %v4574_v62 = vpop.f32.mrf.mxu1 }
 0x2c6   : > { %v1846_v63 = vmax.f32 %v4572_v61, %v4574_v62 }
 0x2c7   : > { %v4578_v2 = vpop.f32.mrf.mxu1 }
 0x2c8   : > { %1847 = vmax.xlane.f32.xlu0 %v1846_v63 }
 0x2c9   : > { %v4580_v3 = vpop.f32.mrf.mxu1 }
 0x2ca   : > { %v1849_v4 = vmax.f32 %v4578_v2, %v4580_v3 }
 0x2cb   : > { %v4584_v5 = vpop.f32.mrf.mxu1 }
 0x2cc   : > { %1850 = vmax.xlane.f32.xlu1 %v1849_v4 }
 0x2cd   : > { %v4586_v6 = vpop.f32.mrf.mxu1 }
 0x2ce   : > { %v1852_v7 = vmax.f32 %v4584_v5, %v4586_v6 }
 0x2cf   : > { %v4590_v8 = vpop.f32.mrf.mxu1 }
 0x2d0   : > { %1853 = vmax.xlane.f32.xlu0 %v1852_v7 }
 0x2d1   : > { %v4592_v0 = vpop.f32.mrf.mxu1 }
 0x2d2   : > { %v1855_v9 = vmax.f32 %v4590_v8, %v4592_v0 }
 0x2d3   : > { %v4596_v10 = vpop.f32.mrf.mxu1 }
 0x2d4   : > { %1856 = vmax.xlane.f32.xlu1 %v1855_v9 }
 0x2d5   : > { %v4598_v1 = vpop.f32.mrf.mxu1 }
 0x2d6   : > { %v1858_v11 = vmax.f32 %v4596_v10, %v4598_v1 }
 0x2d7   : > { %v4602_v12 = vpop.f32.mrf.mxu1 }
 0x2d8   : > { %1859 = vmax.xlane.f32.xlu0 %v1858_v11 }
 0x2d9   : > { %v4604_v13 = vpop.f32.mrf.mxu1 }
 0x2da   : > { %v1861_v14 = vmax.f32 %v4602_v12, %v4604_v13 }
 0x2db   : > { %v4608_v15 = vpop.f32.mrf.mxu1 }
 0x2dc   : > { %1862 = vmax.xlane.f32.xlu1 %v1861_v14 }
 0x2dd   : > { %v4610_v16 = vpop.f32.mrf.mxu1 }
 0x2de   : > { %v1864_v17 = vmax.f32 %v4608_v15, %v4610_v16 }
 0x2df   : > { %v4614_v18 = vpop.f32.mrf.mxu1 }
 0x2e0   : > { %1865 = vmax.xlane.f32.xlu0 %v1864_v17 }
 0x2e1   : > { %v4616_v19 = vpop.f32.mrf.mxu1 }
 0x2e2   : > { %v1867_v21 = vmax.f32 %v4614_v18, %v4616_v19 }
 0x2e3   : > { %v4620_v22 = vpop.f32.mrf.mxu1 }
 0x2e4   : > { %1868 = vmax.xlane.f32.xlu1 %v1867_v21 }
 0x2e5   : > { %v4622_v23 = vpop.f32.mrf.mxu1 }
 0x2e6   : > { %v1870_v24 = vmax.f32 %v4620_v22, %v4622_v23 }
 0x2e7   : > { %v4626_v25 = vpop.f32.mrf.mxu1 }
 0x2e8   : > { %1871 = vmax.xlane.f32.xlu0 %v1870_v24 }
 0x2e9   : > { %v4628_v28 = vpop.f32.mrf.mxu1 }
 0x2ea   : > { %v1873_v31 = vmax.f32 %v4626_v25, %v4628_v28 }
 0x2eb   : > { %v4632_v42 = vpop.f32.mrf.mxu1 }
 0x2ec   : > { %1874 = vmax.xlane.f32.xlu1 %v1873_v31 }
 0x2ed   : > { %v4634_v35 = vpop.f32.mrf.mxu1 }
 0x2ee   : > { %v1876_v38 = vmax.f32 %v4632_v42, %v4634_v35 }
 0x2ef   : > { %v4638_v41 = vpop.f32.mrf.mxu1 }
 0x2f0   : > { %1877 = vmax.xlane.f32.xlu0 %v1876_v38 }
 0x2f1   : > { %v4640_v45 = vpop.f32.mrf.mxu1 }
 0x2f2   : > { %v1879_v48 = vmax.f32 %v4638_v41, %v4640_v45 }
 0x2f3   : > { %v4644_v51 = vpop.f32.mrf.mxu1 }
 0x2f4   : > { %1880 = vmax.xlane.f32.xlu1 %v1879_v48 }
 0x2f5   : > { %v4646_v54 = vpop.f32.mrf.mxu1 }
 0x2f6   : > { %v1882_v57 = vmax.f32 %v4644_v51, %v4646_v54 }
 0x2f7   : > { %v4650_v60 = vpop.f32.mrf.mxu1 }
 0x2f8   : > { %4904 = vst [vmem:[#allocation19_spill] sm:$0xff] %v4650_v60  ;;  %1883 = vmax.xlane.f32.xlu0 %v1882_v57 }
 0x2f9   : > { %v4652_v63 = vpop.f32.mrf.mxu1 }
 0x2fa   : > { %4905 = vst [vmem:[#allocation20_spill] sm:$0xff] %v4652_v63  ;;  %v1885_v4 = vmax.f32 %v4650_v60, %v4652_v63 }
 0x2fb   : > { %v4656_v7 = vpop.f32.mrf.mxu1 }
 0x2fc   : > { %4906 = vst [vmem:[#allocation21_spill] sm:$0xff] %v4656_v7  ;;  %1886 = vmax.xlane.f32.xlu1 %v1885_v4 }
 0x2fd   : > { %v4658_v9 = vpop.f32.mrf.mxu1 }
 0x2fe   : > { %4907 = vst [vmem:[#allocation22_spill] sm:$0xff] %v4658_v9  ;;  %v1888_v11 = vmax.f32 %v4656_v7, %v4658_v9 }
 0x2ff   : > { %v4662_v14 = vpop.f32.mrf.mxu1 }
 0x300   : > { %4908 = vst [vmem:[#allocation23_spill] sm:$0xff] %v4662_v14  ;;  %1889 = vmax.xlane.f32.xlu0 %v1888_v11 }
 0x301   : > { %v4664_v17 = vpop.f32.mrf.mxu1 }
 0x302   : > { %4909 = vst [vmem:[#allocation24_spill] sm:$0xff] %v4664_v17  ;;  %v1891_v21 = vmax.f32 %v4662_v14, %v4664_v17 }
 0x303   : > { %v4668_v24 = vpop.f32.mrf.mxu1 }
 0x304   : > { %4910 = vst [vmem:[#allocation25_spill] sm:$0xff] %v4668_v24  ;;  %1892 = vmax.xlane.f32.xlu1 %v1891_v21 }
 0x305   : > { %v4670_v31 = vpop.f32.mrf.mxu1 }
 0x306   : > { %4911 = vst [vmem:[#allocation26_spill] sm:$0xff] %v4670_v31  ;;  %v1894_v38 = vmax.f32 %v4668_v24, %v4670_v31 }
 0x307   : > { %v4674_v48 = vpop.f32.mrf.mxu1 }
 0x308   : > { %4912 = vst [vmem:[#allocation27_spill] sm:$0xff] %v4674_v48  ;;  %1895 = vmax.xlane.f32.xlu0 %v1894_v38 }
 0x309   : > { %v4676_v57 = vpop.f32.mrf.mxu1 }
 0x30a   : > { %4913 = vst [vmem:[#allocation28_spill] sm:$0xff] %v4676_v57  ;;  %v1897_v4 = vmax.f32 %v4674_v48, %v4676_v57 }
 0x30b   : > { %v4680_v11 = vpop.f32.mrf.mxu1 }
 0x30c   : > { %4914 = vst [vmem:[#allocation29_spill] sm:$0xff] %v4680_v11  ;;  %1898 = vmax.xlane.f32.xlu1 %v1897_v4 }
 0x30d   : > { %v4682_v17 = vpop.f32.mrf.mxu1 }
 0x30e   : > { %4915 = vst [vmem:[#allocation30_spill] sm:$0xff] %v4682_v17  ;;  %v1900_v21 = vmax.f32 %v4680_v11, %v4682_v17 }
 0x30f   : > { %v4686_v14 = vpop.f32.mrf.mxu1 }
 0x310   : > { %1901 = vmax.xlane.f32.xlu0 %v1900_v21 }
 0x311   : > { %v4688_v31 = vpop.f32.mrf.mxu1 }
 0x312   : > { %4916 = vst [vmem:[#allocation31_spill] sm:$0xff] %v4688_v31  ;;  %v1903_v38 = vmax.f32 %v4686_v14, %v4688_v31 }
 0x314   : > { %1904 = vmax.xlane.f32.xlu1 %v1903_v38 }
 0x321   : > { %v1812_v24 = vpop.xlane.xlu0 %1811 }
 0x322   : > { %v1906_v57 = vsub.f32 %v4500_v26, %v1812_v24  ;;  %v1907_v48 = vsub.f32 %v4502_v27, %v1812_v24 }
 0x324   : > { %v1970_v4 = vmul.f32 1.442695, %v1906_v57  ;;  %v1972_v9 = vmul.f32 1.442695, %v1907_v48 }
 0x325   : > { %v1815_v7 = vpop.xlane.xlu0 %1814 }
 0x326   : > { %3708 = vpow2.f32 %v1970_v4  ;;  %v1908_v17 = vsub.f32 %v4506_v29, %v1815_v7  ;;  %v1909_v11 = vsub.f32 %v4508_v30, %v1815_v7 }
 0x327   : > { %3710 = vpow2.f32 %v1972_v9 }
 0x328   : > { %v1974_v21 = vmul.f32 1.442695, %v1908_v17  ;;  %v1976_v63 = vmul.f32 1.442695, %v1909_v11 }
 0x329   : > { %v1818_v60 = vpop.xlane.xlu1 %1817 }
 0x32a   : > { %3712 = vpow2.f32 %v1974_v21  ;;  %v1910_v38 = vsub.f32 %v4512_v20, %v1818_v60  ;;  %v1911_v31 = vsub.f32 %v4514_v32, %v1818_v60 }
 0x32b   : > { %3714 = vpow2.f32 %v1976_v63 }
 0x32c   : > { %v1978_v26 = vmul.f32 1.442695, %v1910_v38  ;;  %v1980_v27 = vmul.f32 1.442695, %v1911_v31 }
 0x32d   : > { %v1821_v24 = vpop.xlane.xlu1 %1820 }
 0x32e   : > { %3716 = vpow2.f32 %v1978_v26  ;;  %v1912_v48 = vsub.f32 %v4518_v33, %v1821_v24  ;;  %v1913_v29 = vsub.f32 %v4520_v34, %v1821_v24 }
 0x32f   : > { %3718 = vpow2.f32 %v1980_v27 }
 0x330   : > { %v1982_v30 = vmul.f32 1.442695, %v1912_v48  ;;  %v1984_v7 = vmul.f32 1.442695, %v1913_v29 }
 0x331   : > { %v1824_v9 = vpop.xlane.xlu0 %1823 }
 0x332   : > { %3720 = vpow2.f32 %v1982_v30  ;;  %v1914_v17 = vsub.f32 %v4524_v36, %v1824_v9  ;;  %v1915_v20 = vsub.f32 %v4526_v37, %v1824_v9 }
 0x333   : > { %v3709_v57 = vpop.eup %3708  ;;  %3722 = vpow2.f32 %v1984_v7 }
 0x334   : > { %v3711_v32 = vpop.eup %3710  ;;  %v1986_v60 = vmul.f32 1.442695, %v1914_v17  ;;  %v1988_v63 = vmul.f32 1.442695, %v1915_v20 }
 0x335   : > { %v1827_v31 = vpop.xlane.xlu1 %1826  ;;  %v2098_v11 = vadd.f32 %v3711_v32, %v3709_v57 }
 0x336   : > { %3724 = vpow2.f32 %v1986_v60  ;;  %v1916_v33 = vsub.f32 %v4530_v39, %v1827_v31  ;;  %v1917_v34 = vsub.f32 %v4532_v40, %v1827_v31 }
 0x337   : > { %v3713_v4 = vpop.eup %3712  ;;  %3726 = vpow2.f32 %v1988_v63  ;;  %2099 = vadd.xlane.f32.xlu0 %v2098_v11 }
 0x338   : > { %v3715_v21 = vpop.eup %3714  ;;  %v1990_v38 = vmul.f32 1.442695, %v1916_v33  ;;  %v1992_v36 = vmul.f32 1.442695, %v1917_v34  ;;  %v2194_v26 = vpack.c.bf16 %v3713_v4, %v3709_v57 }
 0x339   : > { %v1830_v37 = vpop.xlane.xlu0 %1829  ;;  %v2195_v27 = vpack.c.bf16 %v3715_v21, %v3711_v32  ;;  %v2101_v24 = vadd.f32 %v3715_v21, %v3713_v4 }
 0x33a   : > { %3728 = vpow2.f32 %v1990_v38  ;;  %v1918_v48 = vsub.f32 %v4536_v43, %v1830_v37  ;;  %v1919_v29 = vsub.f32 %v4538_v44, %v1830_v37 }
 0x33b   : > { %v3717_v30 = vpop.eup %3716  ;;  %3730 = vpow2.f32 %v1992_v36  ;;  %2386 = vmatprep.mubr.bf16.mxu0 %v2195_v27  ;;  %2102 = vadd.xlane.f32.xlu1 %v2101_v24 }
 0x33c   : > { %v3719_v39 = vpop.eup %3718  ;;  %v1994_v40 = vmul.f32 1.442695, %v1918_v48  ;;  %v1996_v7 = vmul.f32 1.442695, %v1919_v29  ;;  %2387 = vmatmul.mubr.bf16.vlgmr.msra.gmra.mxu0 %v2194_v26 }
 0x33d   : > { %v1833_v9 = vpop.xlane.xlu1 %1832  ;;  %v2104_v17 = vadd.f32 %v3719_v39, %v3717_v30 }
 0x33e   : > { %3732 = vpow2.f32 %v1994_v40  ;;  %v1920_v20 = vsub.f32 %v4542_v46, %v1833_v9  ;;  %v1921_v57 = vsub.f32 %v4544_v47, %v1833_v9 }
 0x33f   : > { %v3721_v32 = vpop.eup %3720  ;;  %3734 = vpow2.f32 %v1996_v7  ;;  %2105 = vadd.xlane.f32.xlu0 %v2104_v17 }
 0x340   : > { %v3723_v43 = vpop.eup %3722  ;;  %v1998_v44 = vmul.f32 1.442695, %v1920_v20  ;;  %v2000_v60 = vmul.f32 1.442695, %v1921_v57  ;;  %v2196_v63 = vpack.c.bf16 %v3721_v32, %v3717_v30 }
 0x341   : > { %v1836_v31 = vpop.xlane.xlu0 %1835  ;;  %v2197_v11 = vpack.c.bf16 %v3723_v43, %v3719_v39  ;;  %v2107_v33 = vadd.f32 %v3723_v43, %v3721_v32 }
 0x342   : > { %3736 = vpow2.f32 %v1998_v44  ;;  %v1922_v34 = vsub.f32 %v4548_v49, %v1836_v31  ;;  %v1923_v4 = vsub.f32 %v4550_v50, %v1836_v31 }
 0x343   : > { %v3725_v21 = vpop.eup %3724  ;;  %3738 = vpow2.f32 %v2000_v60  ;;  %2394 = vmatprep.mubr.bf16.mxu0 %v2197_v11  ;;  %2108 = vadd.xlane.f32.xlu1 %v2107_v33 }
 0x344   : > { %v3727_v46 = vpop.eup %3726  ;;  %v2002_v47 = vmul.f32 1.442695, %v1922_v34  ;;  %v2004_v38 = vmul.f32 1.442695, %v1923_v4  ;;  %2395 = vmatmul.mubr.bf16.gmra.mxu0 %v2196_v63 }
 0x345   : > { %v1839_v36 = vpop.xlane.xlu1 %1838  ;;  %v2110_v26 = vadd.f32 %v3727_v46, %v3725_v21 }
 0x346   : > { %3740 = vpow2.f32 %v2002_v47  ;;  %v1924_v37 = vsub.f32 %v4554_v52, %v1839_v36  ;;  %v1925_v27 = vsub.f32 %v4556_v53, %v1839_v36 }
 0x347   : > { %v3729_v24 = vpop.eup %3728  ;;  %3742 = vpow2.f32 %v2004_v38  ;;  %2111 = vadd.xlane.f32.xlu0 %v2110_v26 }
 0x348   : > { %v3731_v49 = vpop.eup %3730  ;;  %v2006_v50 = vmul.f32 1.442695, %v1924_v37  ;;  %v2008_v48 = vmul.f32 1.442695, %v1925_v27  ;;  %v2198_v29 = vpack.c.bf16 %v3729_v24, %v3725_v21 }
 0x349   : > { %v1842_v30 = vpop.xlane.xlu0 %1841  ;;  %v2199_v39 = vpack.c.bf16 %v3731_v49, %v3727_v46  ;;  %v2113_v40 = vadd.f32 %v3731_v49, %v3729_v24 }
 0x34a   : > { %3744 = vpow2.f32 %v2006_v50  ;;  %v1926_v7 = vsub.f32 %v4560_v55, %v1842_v30  ;;  %v1927_v9 = vsub.f32 %v4562_v56, %v1842_v30 }
 0x34b   : > { %v3733_v17 = vpop.eup %3732  ;;  %3746 = vpow2.f32 %v2008_v48  ;;  %2402 = vmatprep.mubr.bf16.mxu0 %v2199_v39  ;;  %2114 = vadd.xlane.f32.xlu1 %v2113_v40 }
 0x34c   : > { %v3735_v52 = vpop.eup %3734  ;;  %v2010_v53 = vmul.f32 1.442695, %v1926_v7  ;;  %v2012_v20 = vmul.f32 1.442695, %v1927_v9  ;;  %2403 = vmatmul.mubr.bf16.gmra.mxu0 %v2198_v29 }
 0x34d   : > { %v1845_v57 = vpop.xlane.xlu1 %1844  ;;  %v2116_v32 = vadd.f32 %v3735_v52, %v3733_v17 }
 0x34e   : > { %3748 = vpow2.f32 %v2010_v53  ;;  %v1928_v43 = vsub.f32 %v4566_v58, %v1845_v57  ;;  %v1929_v44 = vsub.f32 %v4568_v59, %v1845_v57 }
 0x34f   : > { %v3737_v60 = vpop.eup %3736  ;;  %3750 = vpow2.f32 %v2012_v20  ;;  %2117 = vadd.xlane.f32.xlu0 %v2116_v32 }
 0x350   : > { %v3739_v55 = vpop.eup %3738  ;;  %v2014_v56 = vmul.f32 1.442695, %v1928_v43  ;;  %v2016_v63 = vmul.f32 1.442695, %v1929_v44  ;;  %v2200_v31 = vpack.c.bf16 %v3737_v60, %v3733_v17 }
 0x351   : > { %v1848_v11 = vpop.xlane.xlu0 %1847  ;;  %v2201_v33 = vpack.c.bf16 %v3739_v55, %v3735_v52  ;;  %v2119_v34 = vadd.f32 %v3739_v55, %v3737_v60 }
 0x352   : > { %3752 = vpow2.f32 %v2014_v56  ;;  %v1930_v4 = vsub.f32 %v4572_v61, %v1848_v11  ;;  %v1931_v21 = vsub.f32 %v4574_v62, %v1848_v11 }
 0x353   : > { %v3741_v46 = vpop.eup %3740  ;;  %3754 = vpow2.f32 %v2016_v63  ;;  %2410 = vmatprep.mubr.bf16.mxu0 %v2201_v33  ;;  %2120 = vadd.xlane.f32.xlu1 %v2119_v34 }
 0x354   : > { %v3743_v58 = vpop.eup %3742  ;;  %v2018_v59 = vmul.f32 1.442695, %v1930_v4  ;;  %v2020_v47 = vmul.f32 1.442695, %v1931_v21  ;;  %2411 = vmatmul.mubr.bf16.gmra.mxu0 %v2200_v31 }
 0x355   : > { %v1851_v38 = vpop.xlane.xlu1 %1850  ;;  %v2122_v36 = vadd.f32 %v3743_v58, %v3741_v46 }
 0x356   : > { %3756 = vpow2.f32 %v2018_v59  ;;  %v1932_v26 = vsub.f32 %v4578_v2, %v1851_v38  ;;  %v1933_v37 = vsub.f32 %v4580_v3, %v1851_v38 }
 0x357   : > { %v3745_v27 = vpop.eup %3744  ;;  %3758 = vpow2.f32 %v2020_v47  ;;  %2123 = vadd.xlane.f32.xlu0 %v2122_v36 }
 0x358   : > { %v3747_v61 = vpop.eup %3746  ;;  %v2022_v62 = vmul.f32 1.442695, %v1932_v26  ;;  %v2024_v24 = vmul.f32 1.442695, %v1933_v37  ;;  %v2202_v49 = vpack.c.bf16 %v3745_v27, %v3741_v46 }
 0x359   : > { %v1854_v50 = vpop.xlane.xlu0 %1853  ;;  %v2203_v48 = vpack.c.bf16 %v3747_v61, %v3743_v58  ;;  %v2125_v29 = vadd.f32 %v3747_v61, %v3745_v27 }
 0x35a   : > { %3760 = vpow2.f32 %v2022_v62  ;;  %v1934_v30 = vsub.f32 %v4584_v5, %v1854_v50  ;;  %v1935_v39 = vsub.f32 %v4586_v6, %v1854_v50 }
 0x35b   : > { %v3749_v40 = vpop.eup %3748  ;;  %3762 = vpow2.f32 %v2024_v24  ;;  %2418 = vmatprep.mubr.bf16.mxu0 %v2203_v48  ;;  %2126 = vadd.xlane.f32.xlu1 %v2125_v29 }
 0x35c   : > { %v3751_v2 = vpop.eup %3750  ;;  %v2026_v3 = vmul.f32 1.442695, %v1934_v30  ;;  %v2028_v7 = vmul.f32 1.442695, %v1935_v39  ;;  %2419 = vmatmul.mubr.bf16.gmra.mxu0 %v2202_v49 }
 0x35d   : > { %v1857_v9 = vpop.xlane.xlu1 %1856  ;;  %v2128_v17 = vadd.f32 %v3751_v2, %v3749_v40 }
 0x35e   : > { %3764 = vpow2.f32 %v2026_v3  ;;  %v1936_v52 = vsub.f32 %v4590_v8, %v1857_v9  ;;  %v1937_v53 = vsub.f32 %v4592_v0, %v1857_v9 }
 0x35f   : > { %v3753_v20 = vpop.eup %3752  ;;  %3766 = vpow2.f32 %v2028_v7  ;;  %2129 = vadd.xlane.f32.xlu0 %v2128_v17 }
 0x360   : > { %v3755_v5 = vpop.eup %3754  ;;  %v2030_v6 = vmul.f32 1.442695, %v1936_v52  ;;  %v2032_v57 = vmul.f32 1.442695, %v1937_v53  ;;  %v2204_v32 = vpack.c.bf16 %v3753_v20, %v3749_v40 }
 0x361   : > { %v1860_v43 = vpop.xlane.xlu0 %1859  ;;  %v2205_v44 = vpack.c.bf16 %v3755_v5, %v3751_v2  ;;  %v2131_v60 = vadd.f32 %v3755_v5, %v3753_v20 }
 0x362   : > { %3768 = vpow2.f32 %v2030_v6  ;;  %v1938_v55 = vsub.f32 %v4596_v10, %v1860_v43  ;;  %v1939_v56 = vsub.f32 %v4598_v1, %v1860_v43 }
 0x363   : > { %v3757_v63 = vpop.eup %3756  ;;  %3770 = vpow2.f32 %v2032_v57  ;;  %2426 = vmatprep.mubr.bf16.mxu0 %v2205_v44  ;;  %2132 = vadd.xlane.f32.xlu1 %v2131_v60 }
 0x364   : > { %v3759_v8 = vpop.eup %3758  ;;  %v2034_v0 = vmul.f32 1.442695, %v1938_v55  ;;  %v2036_v31 = vmul.f32 1.442695, %v1939_v56  ;;  %2427 = vmatmul.mubr.bf16.gmra.mxu0 %v2204_v32 }
 0x365   : > { %v1863_v11 = vpop.xlane.xlu1 %1862  ;;  %v2134_v33 = vadd.f32 %v3759_v8, %v3757_v63 }
 0x366   : > { %3772 = vpow2.f32 %v2034_v0  ;;  %v1940_v34 = vsub.f32 %v4602_v12, %v1863_v11  ;;  %v1941_v4 = vsub.f32 %v4604_v13, %v1863_v11 }
 0x367   : > { %v3761_v21 = vpop.eup %3760  ;;  %3774 = vpow2.f32 %v2036_v31  ;;  %2135 = vadd.xlane.f32.xlu0 %v2134_v33 }
 0x368   : > { %v3763_v10 = vpop.eup %3762  ;;  %v2038_v1 = vmul.f32 1.442695, %v1940_v34  ;;  %v2040_v46 = vmul.f32 1.442695, %v1941_v4  ;;  %v2206_v58 = vpack.c.bf16 %v3761_v21, %v3757_v63 }
 0x369   : > { %v1866_v59 = vpop.xlane.xlu0 %1865  ;;  %v2207_v47 = vpack.c.bf16 %v3763_v10, %v3759_v8  ;;  %v2137_v38 = vadd.f32 %v3763_v10, %v3761_v21 }
 0x36a   : > { %3776 = vpow2.f32 %v2038_v1  ;;  %v1942_v36 = vsub.f32 %v4608_v15, %v1866_v59  ;;  %v1943_v26 = vsub.f32 %v4610_v16, %v1866_v59 }
 0x36b   : > { %v3765_v37 = vpop.eup %3764  ;;  %3778 = vpow2.f32 %v2040_v46  ;;  %2434 = vmatprep.mubr.bf16.mxu0 %v2207_v47  ;;  %2138 = vadd.xlane.f32.xlu1 %v2137_v38 }
 0x36c   : > { %v3767_v12 = vpop.eup %3766  ;;  %v2042_v13 = vmul.f32 1.442695, %v1942_v36  ;;  %v2044_v27 = vmul.f32 1.442695, %v1943_v26  ;;  %2435 = vmatmul.mubr.bf16.gmra.mxu0 %v2206_v58  ;;  %v4917_v26 = vld [vmem:[#allocation19_spill] sm:$0xff] }
 0x36d   : > { %v1869_v61 = vpop.xlane.xlu1 %1868  ;;  %v2140_v62 = vadd.f32 %v3767_v12, %v3765_v37 }
 0x36e   : > { %3780 = vpow2.f32 %v2042_v13  ;;  %v1944_v24 = vsub.f32 %v4614_v18, %v1869_v61  ;;  %v1945_v49 = vsub.f32 %v4616_v19, %v1869_v61 }
 0x36f   : > { %v3769_v50 = vpop.eup %3768  ;;  %3782 = vpow2.f32 %v2044_v27  ;;  %2141 = vadd.xlane.f32.xlu0 %v2140_v62 }
 0x370   : > { %v3771_v15 = vpop.eup %3770  ;;  %v2046_v16 = vmul.f32 1.442695, %v1944_v24  ;;  %v2048_v48 = vmul.f32 1.442695, %v1945_v49  ;;  %v2208_v29 = vpack.c.bf16 %v3769_v50, %v3765_v37 }
 0x371   : > { %v1872_v30 = vpop.xlane.xlu0 %1871  ;;  %v2209_v39 = vpack.c.bf16 %v3771_v15, %v3767_v12  ;;  %v2143_v40 = vadd.f32 %v3771_v15, %v3769_v50  ;;  %v4918_v12 = vld [vmem:[#allocation20_spill] sm:$0xff]  ;;  %v4919_v15 = vld [vmem:[#allocation21_spill] sm:$0xff] }
 0x372   : > { %3784 = vpow2.f32 %v2046_v16  ;;  %v1946_v2 = vsub.f32 %v4620_v22, %v1872_v30  ;;  %v1947_v3 = vsub.f32 %v4622_v23, %v1872_v30 }
 0x373   : > { %v3773_v7 = vpop.eup %3772  ;;  %3786 = vpow2.f32 %v2048_v48  ;;  %2442 = vmatprep.mubr.bf16.mxu0 %v2209_v39  ;;  %2144 = vadd.xlane.f32.xlu1 %v2143_v40  ;;  %v4920_v48 = vld [vmem:[#allocation22_spill] sm:$0xff] }
 0x374   : > { %v3775_v18 = vpop.eup %3774  ;;  %v2050_v19 = vmul.f32 1.442695, %v1946_v2  ;;  %v2052_v9 = vmul.f32 1.442695, %v1947_v3  ;;  %2443 = vmatmul.mubr.bf16.gmra.mxu0 %v2208_v29 }
 0x375   : > { %v1875_v17 = vpop.xlane.xlu1 %1874  ;;  %v2146_v52 = vadd.f32 %v3775_v18, %v3773_v7 }
 0x376   : > { %3788 = vpow2.f32 %v2050_v19  ;;  %v1948_v53 = vsub.f32 %v4626_v25, %v1875_v17  ;;  %v1949_v20 = vsub.f32 %v4628_v28, %v1875_v17 }
 0x377   : > { %v3777_v5 = vpop.eup %3776  ;;  %3790 = vpow2.f32 %v2052_v9  ;;  %2147 = vadd.xlane.f32.xlu0 %v2146_v52  ;;  %v4922_v9 = vld [vmem:[#allocation24_spill] sm:$0xff] }
 0x378   : > { %v3779_v22 = vpop.eup %3778  ;;  %v2054_v23 = vmul.f32 1.442695, %v1948_v53  ;;  %v2056_v6 = vmul.f32 1.442695, %v1949_v20  ;;  %v2210_v57 = vpack.c.bf16 %v3777_v5, %v3773_v7 }
 0x379   : > { %v1878_v32 = vpop.xlane.xlu0 %1877  ;;  %v2211_v43 = vpack.c.bf16 %v3779_v22, %v3775_v18  ;;  %v2149_v44 = vadd.f32 %v3779_v22, %v3777_v5  ;;  %v4921_v18 = vld [vmem:[#allocation23_spill] sm:$0xff] }
 0x37a   : > { %3792 = vpow2.f32 %v2054_v23  ;;  %v1950_v60 = vsub.f32 %v4632_v42, %v1878_v32  ;;  %v1951_v55 = vsub.f32 %v4634_v35, %v1878_v32  ;;  %v4923_v32 = vld [vmem:[#allocation25_spill] sm:$0xff] }
 0x37b   : > { %v3781_v56 = vpop.eup %3780  ;;  %3794 = vpow2.f32 %v2056_v6  ;;  %2450 = vmatprep.mubr.bf16.mxu0 %v2211_v43  ;;  %2150 = vadd.xlane.f32.xlu1 %v2149_v44  ;;  %v4924_v44 = vld [vmem:[#allocation26_spill] sm:$0xff] }
 0x37c   : > { %v3783_v25 = vpop.eup %3782  ;;  %v2058_v28 = vmul.f32 1.442695, %v1950_v60  ;;  %v2060_v63 = vmul.f32 1.442695, %v1951_v55  ;;  %2451 = vmatmul.mubr.bf16.gmra.mxu0 %v2210_v57 }
 0x37d   : > { %v1881_v8 = vpop.xlane.xlu1 %1880  ;;  %v2152_v0 = vadd.f32 %v3783_v25, %v3781_v56 }
 0x37e   : > { %3796 = vpow2.f32 %v2058_v28  ;;  %v1952_v31 = vsub.f32 %v4638_v41, %v1881_v8  ;;  %v1953_v11 = vsub.f32 %v4640_v45, %v1881_v8 }
 0x37f   : > { %v3785_v33 = vpop.eup %3784  ;;  %3798 = vpow2.f32 %v2060_v63  ;;  %2153 = vadd.xlane.f32.xlu0 %v2152_v0  ;;  %v4925_v0 = vld [vmem:[#allocation27_spill] sm:$0xff] }
 0x380   : > { %v3787_v42 = vpop.eup %3786  ;;  %v2062_v35 = vmul.f32 1.442695, %v1952_v31  ;;  %v2064_v34 = vmul.f32 1.442695, %v1953_v11  ;;  %v2212_v4 = vpack.c.bf16 %v3785_v33, %v3781_v56  ;;  %v4926_v11 = vld [vmem:[#allocation28_spill] sm:$0xff] }
 0x381   : > { %v1884_v21 = vpop.xlane.xlu0 %1883  ;;  %v2213_v10 = vpack.c.bf16 %v3787_v42, %v3783_v25  ;;  %v2155_v1 = vadd.f32 %v3787_v42, %v3785_v33 }
 0x382   : > { %3800 = vpow2.f32 %v2062_v35  ;;  %v1954_v46 = vsub.f32 %v4644_v51, %v1884_v21  ;;  %v1955_v58 = vsub.f32 %v4646_v54, %v1884_v21 }
 0x383   : > { %v3789_v59 = vpop.eup %3788  ;;  %3802 = vpow2.f32 %v2064_v34  ;;  %2458 = vmatprep.mubr.bf16.mxu0 %v2213_v10  ;;  %2156 = vadd.xlane.f32.xlu1 %v2155_v1 }
 0x384   : > { %v3791_v41 = vpop.eup %3790  ;;  %v2066_v45 = vmul.f32 1.442695, %v1954_v46  ;;  %v2068_v47 = vmul.f32 1.442695, %v1955_v58  ;;  %2459 = vmatmul.mubr.bf16.gmra.mxu0 %v2212_v4  ;;  %v4927_v58 = vld [vmem:[#allocation29_spill] sm:$0xff] }
 0x385   : > { %v1887_v38 = vpop.xlane.xlu1 %1886  ;;  %v2158_v36 = vadd.f32 %v3791_v41, %v3789_v59 }
 0x386   : > { %3804 = vpow2.f32 %v2066_v45  ;;  %v1956_v37 = vsub.f32 %v4917_v26, %v1887_v38  ;;  %v1957_v13 = vsub.f32 %v4918_v12, %v1887_v38 }
 0x387   : > { %v3793_v27 = vpop.eup %3792  ;;  %3806 = vpow2.f32 %v2068_v47  ;;  %2159 = vadd.xlane.f32.xlu0 %v2158_v36 }
 0x388   : > { %v3795_v51 = vpop.eup %3794  ;;  %v2070_v54 = vmul.f32 1.442695, %v1956_v37  ;;  %v2072_v61 = vmul.f32 1.442695, %v1957_v13  ;;  %v2214_v62 = vpack.c.bf16 %v3793_v27, %v3789_v59 }
 0x389   : > { %v1890_v24 = vpop.xlane.xlu0 %1889  ;;  %v2215_v49 = vpack.c.bf16 %v3795_v51, %v3791_v41  ;;  %v2161_v50 = vadd.f32 %v3795_v51, %v3793_v27  ;;  %v4928_v41 = vld [vmem:[#allocation30_spill] sm:$0xff]  ;;  %v4929_v27 = vld [vmem:[#allocation31_spill] sm:$0xff] }
 0x38a   : > { %3808 = vpow2.f32 %v2070_v54  ;;  %v1958_v16 = vsub.f32 %v4919_v15, %v1890_v24  ;;  %v1959_v29 = vsub.f32 %v4920_v48, %v1890_v24 }
 0x38b   : > { %v3797_v30 = vpop.eup %3796  ;;  %3810 = vpow2.f32 %v2072_v61  ;;  %2466 = vmatprep.mubr.bf16.mxu0 %v2215_v49  ;;  %2162 = vadd.xlane.f32.xlu1 %v2161_v50 }
 0x38c   : > { %v3799_v39 = vpop.eup %3798  ;;  %v2074_v40 = vmul.f32 1.442695, %v1958_v16  ;;  %v2076_v2 = vmul.f32 1.442695, %v1959_v29  ;;  %2467 = vmatmul.mubr.bf16.gmra.mxu0 %v2214_v62 }
 0x38d   : > { %v1893_v3 = vpop.xlane.xlu1 %1892  ;;  %v2164_v7 = vadd.f32 %v3799_v39, %v3797_v30 }
 0x38e   : > { %3812 = vpow2.f32 %v2074_v40  ;;  %v1960_v19 = vsub.f32 %v4921_v18, %v1893_v3  ;;  %v1961_v17 = vsub.f32 %v4922_v9, %v1893_v3 }
 0x38f   : > { %v3801_v52 = vpop.eup %3800  ;;  %3814 = vpow2.f32 %v2076_v2  ;;  %2165 = vadd.xlane.f32.xlu0 %v2164_v7 }
 0x390   : > { %v3803_v53 = vpop.eup %3802  ;;  %v2078_v20 = vmul.f32 1.442695, %v1960_v19  ;;  %v2080_v5 = vmul.f32 1.442695, %v1961_v17  ;;  %v2216_v22 = vpack.c.bf16 %v3801_v52, %v3797_v30 }
 0x391   : > { %v1896_v23 = vpop.xlane.xlu0 %1895  ;;  %v2217_v6 = vpack.c.bf16 %v3803_v53, %v3799_v39  ;;  %v2167_v57 = vadd.f32 %v3803_v53, %v3801_v52 }
 0x392   : > { %3816 = vpow2.f32 %v2078_v20  ;;  %v1962_v43 = vsub.f32 %v4923_v32, %v1896_v23  ;;  %v1963_v60 = vsub.f32 %v4924_v44, %v1896_v23  ;;  %v3900_v32 = vld [vmem:[%s4315_s12] sm:$0xff]  }
 0x393   : > { %v3805_v55 = vpop.eup %3804  ;;  %3818 = vpow2.f32 %v2080_v5  ;;  %2474 = vmatprep.mubr.bf16.mxu0 %v2217_v6  ;;  %2168 = vadd.xlane.f32.xlu1 %v2167_v57 }
 0x394   : > { %v3807_v56 = vpop.eup %3806  ;;  %v2082_v25 = vmul.f32 1.442695, %v1962_v43  ;;  %v2084_v28 = vmul.f32 1.442695, %v1963_v60  ;;  %2475 = vmatmul.mubr.bf16.gmra.mxu0 %v2216_v22  ;;  %v2579_v43 = vunpack.c.l.bf16 %v3900_v32 }
 0x395   : > { %v1899_v63 = vpop.xlane.xlu1 %1898  ;;  %v2170_v8 = vadd.f32 %v3807_v56, %v3805_v55 }
 0x396   : > { %3820 = vpow2.f32 %v2082_v25  ;;  %v1964_v31 = vsub.f32 %v4925_v0, %v1899_v63  ;;  %v1965_v33 = vsub.f32 %v4926_v11, %v1899_v63  ;;  %v2580_v63 = vunpack.c.h.bf16 %v3900_v32 }
 0x397   : > { %v3809_v42 = vpop.eup %3808  ;;  %3822 = vpow2.f32 %v2084_v28  ;;  %2171 = vadd.xlane.f32.xlu0 %v2170_v8 }
 0x398   : > { %v3811_v35 = vpop.eup %3810  ;;  %v2086_v34 = vmul.f32 1.442695, %v1964_v31  ;;  %v2088_v4 = vmul.f32 1.442695, %v1965_v33  ;;  %v2218_v21 = vpack.c.bf16 %v3809_v42, %v3805_v55 }
 0x399   : > { %v1902_v10 = vpop.xlane.xlu0 %1901  ;;  %v2219_v1 = vpack.c.bf16 %v3811_v35, %v3807_v56  ;;  %v2173_v46 = vadd.f32 %v3811_v35, %v3809_v42 }
 0x39a   : > { %3824 = vpow2.f32 %v2086_v34  ;;  %v1966_v59 = vsub.f32 %v4927_v58, %v1902_v10  ;;  %v1967_v45 = vsub.f32 %v4928_v41, %v1902_v10 }
 0x39b   : > { %v3813_v47 = vpop.eup %3812  ;;  %3826 = vpow2.f32 %v2088_v4  ;;  %2482 = vmatprep.mubr.bf16.mxu0 %v2219_v1  ;;  %2174 = vadd.xlane.f32.xlu1 %v2173_v46 }
 0x39c   : > { %v3815_v38 = vpop.eup %3814  ;;  %v2090_v36 = vmul.f32 1.442695, %v1966_v59  ;;  %v2092_v26 = vmul.f32 1.442695, %v1967_v45  ;;  %2483 = vmatmul.mubr.bf16.gmra.mxu0 %v2218_v21  ;;  %v3901_v21 = vld [vmem:[%s4315_s12 + $0x8] sm:$0xff]  }
 0x39d   : > { %v1905_v37 = vpop.xlane.xlu1 %1904  ;;  %v2176_v12 = vadd.f32 %v3815_v38, %v3813_v47  ;;  %v2581_v10 = vunpack.c.l.bf16 %v3901_v21 }
 0x39e   : > { %3828 = vpow2.f32 %v2090_v36  ;;  %v1968_v13 = vsub.f32 %v4686_v14, %v1905_v37  ;;  %v1969_v51 = vsub.f32 %v4929_v27, %v1905_v37  ;;  %v3902_v27 = vld [vmem:[%s4315_s12 + $0x10] sm:$0xff]  }
 0x39f   : > { %v3817_v54 = vpop.eup %3816  ;;  %3830 = vpow2.f32 %v2092_v26  ;;  %2177 = vadd.xlane.f32.xlu0 %v2176_v12 }
 0x3a0   : > { %v3819_v61 = vpop.eup %3818  ;;  %v2094_v62 = vmul.f32 1.442695, %v1968_v13  ;;  %v2096_v24 = vmul.f32 1.442695, %v1969_v51  ;;  %v2220_v49 = vpack.c.bf16 %v3817_v54, %v3813_v47  ;;  %v2583_v51 = vunpack.c.l.bf16 %v3902_v27 }
 0x3a1   : > { %v2221_v50 = vpack.c.bf16 %v3819_v61, %v3815_v38  ;;  %v2179_v15 = vadd.f32 %v3819_v61, %v3817_v54  ;;  %v2582_v38 = vunpack.c.h.bf16 %v3901_v21 }
 0x3a2   : > { %3832 = vpow2.f32 %v2094_v62 }
 0x3a3   : > { %v3821_v16 = vpop.eup %3820  ;;  %3834 = vpow2.f32 %v2096_v24  ;;  %2490 = vmatprep.mubr.bf16.mxu0 %v2221_v50  ;;  %2180 = vadd.xlane.f32.xlu1 %v2179_v15 }
 0x3a4   : > { %v3823_v48 = vpop.eup %3822  ;;  %2491 = vmatmul.mubr.bf16.gmra.mxu0 %v2220_v49 }
 0x3a5   : > { %v2182_v29 = vadd.f32 %v3823_v48, %v3821_v16 }
 0x3a7   : > { %v3825_v14 = vpop.eup %3824  ;;  %2183 = vadd.xlane.f32.xlu0 %v2182_v29 }
 0x3a8   : > { %v3827_v30 = vpop.eup %3826  ;;  %v2222_v39 = vpack.c.bf16 %v3825_v14, %v3821_v16  ;;  %v2584_v16 = vunpack.c.h.bf16 %v3902_v27 }
 0x3a9   : > { %v2223_v40 = vpack.c.bf16 %v3827_v30, %v3823_v48  ;;  %v2185_v2 = vadd.f32 %v3827_v30, %v3825_v14 }
 0x3ab   : > { %v3829_v3 = vpop.eup %3828  ;;  %2498 = vmatprep.mubr.bf16.mxu0 %v2223_v40  ;;  %2186 = vadd.xlane.f32.xlu1 %v2185_v2 }
 0x3ac   : > { %v3831_v7 = vpop.eup %3830  ;;  %2499 = vmatmul.mubr.bf16.gmra.mxu0 %v2222_v39 }
 0x3ad   : > { %v2188_v18 = vadd.f32 %v3831_v7, %v3829_v3 }
 0x3af   : > { %v3833_v19 = vpop.eup %3832  ;;  %2189 = vadd.xlane.f32.xlu0 %v2188_v18 }
 0x3b0   : > { %v3835_v9 = vpop.eup %3834  ;;  %v2224_v17 = vpack.c.bf16 %v3833_v19, %v3829_v3  ;;  %v3903_v3 = vld [vmem:[%s4315_s12 + $0x18] sm:$0xff]  }
 0x3b1   : > { %v2225_v52 = vpack.c.bf16 %v3835_v9, %v3831_v7  ;;  %v2191_v53 = vadd.f32 %v3835_v9, %v3833_v19  ;;  %v2585_v7 = vunpack.c.l.bf16 %v3903_v3 }
 0x3b3   : > { %2506 = vmatprep.mubr.bf16.mxu0 %v2225_v52  ;;  %2192 = vadd.xlane.f32.xlu1 %v2191_v53 }
 0x3b4   : > { %2507 = vmatmul.mubr.bf16.gmra.mxu0 %v2224_v17 }
 0x3c0   : > { %v2100_v20 = vpop.xlane.xlu0 %2099 }
 0x3c1   : > { %3836 = vrcp.f32 %v2100_v20 }
 0x3c4   : > { %v2103_v5 = vpop.xlane.xlu1 %2102 }
 0x3c5   : > { %3838 = vrcp.f32 %v2103_v5  ;;  %v2586_v5 = vunpack.c.h.bf16 %v3903_v3 }
 0x3c8   : > { %v2106_v22 = vpop.xlane.xlu0 %2105 }
 0x3c9   : > { %3840 = vrcp.f32 %v2106_v22 }
 0x3cc   : > { %v2109_v23 = vpop.xlane.xlu1 %2108 }
 0x3cd   : > { %3842 = vrcp.f32 %v2109_v23 }
 0x3ce   : > { %v3837_v60 = vpop.eup %3836 }
 0x3d0   : > { %v2112_v55 = vpop.xlane.xlu0 %2111 }
 0x3d1   : > { %3844 = vrcp.f32 %v2112_v55 }
 0x3d2   : > { %v3839_v31 = vpop.eup %3838 }
 0x3d4   : > { %v2115_v11 = vpop.xlane.xlu1 %2114 }
 0x3d5   : > { %3846 = vrcp.f32 %v2115_v11 }
 0x3d6   : > { %v3841_v1 = vpop.eup %3840 }
 0x3d8   : > { %v2118_v46 = vpop.xlane.xlu0 %2117 }
 0x3d9   : > { %3848 = vrcp.f32 %v2118_v46 }
 0x3da   : > { %v3843_v36 = vpop.eup %3842 }
 0x3dc   : > { %v2121_v26 = vpop.xlane.xlu1 %2120 }
 0x3dd   : > { %3850 = vrcp.f32 %v2121_v26 }
 0x3de   : > { %v3845_v62 = vpop.eup %3844 }
 0x3e0   : > { %v2124_v24 = vpop.xlane.xlu0 %2123 }
 0x3e1   : > { %3852 = vrcp.f32 %v2124_v24 }
 0x3e2   : > { %v3847_v14 = vpop.eup %3846 }
 0x3e4   : > { %v2127_v30 = vpop.xlane.xlu1 %2126 }
 0x3e5   : > { %3854 = vrcp.f32 %v2127_v30 }
 0x3e6   : > { %v3849_v9 = vpop.eup %3848 }
 0x3e8   : > { %v2130_v17 = vpop.xlane.xlu0 %2129 }
 0x3e9   : > { %3856 = vrcp.f32 %v2130_v17 }
 0x3fc   : > { %v3341_v6 = vpop.f32.mrf.mxu0 }
 0x3fe   : > { %v3342_v57 = vpop.f32.mrf.mxu0 }
 0x3ff   : > { %v3343_v44 = vadd.f32 %v3342_v57, %v3341_v6  ;;  %v3851_v6 = vpop.eup %3850  ;;  %v2133_v57 = vpop.xlane.xlu1 %2132 }
 0x400   : > { %v3344_v56 = vpop.f32.mrf.mxu0  ;;  %3858 = vrcp.f32 %v2133_v57 }
 0x401   : > { %v2547_v25 = vmul.f32 %v3837_v60, %v3343_v44  ;;  %v3904_v60 = vld [vmem:[%s4315_s12 + $0x20] sm:$0xff]  }
 0x402   : > { %v3345_v28 = vpop.f32.mrf.mxu0  ;;  %v2587_v55 = vunpack.c.l.bf16 %v3904_v60  ;;  %v2588_v11 = vunpack.c.h.bf16 %v3904_v60 }
 0x403   : > { %v2611_v8 = vadd.f32 %v2579_v43, %v2547_v25  ;;  %v3346_v0 = vadd.f32 %v3345_v28, %v3344_v56  ;;  %v3853_v28 = vpop.eup %3852 }
 0x404   : > { %v3347_v33 = vpop.f32.mrf.mxu0 }
 0x405   : > { %2643 = vst [vmem:[%s4758_s16] sm:$0xff] %v2611_v8  ;;  %v2548_v42 = vmul.f32 %v3839_v31, %v3346_v0 }
 0x406   : > { %v3348_v35 = vpop.f32.mrf.mxu0 }
 0x407   : > { %v2612_v34 = vadd.f32 %v2580_v63, %v2548_v42  ;;  %v3349_v4 = vadd.f32 %v3348_v35, %v3347_v33  ;;  %v2136_v63 = vpop.xlane.xlu0 %2135  ;;  %v3855_v35 = vpop.eup %3854 }
 0x408   : > { %v3350_v58 = vpop.f32.mrf.mxu0  ;;  %3860 = vrcp.f32 %v2136_v63 }
 0x409   : > { %2644 = vst [vmem:[%s4758_s16 + $0x8] sm:$0xff] %v2612_v34  ;;  %v2549_v59 = vmul.f32 %v3841_v1, %v3349_v4  ;;  %v2139_v34 = vpop.xlane.xlu1 %2138  ;;  %v3905_v1 = vld [vmem:[%s4315_s12 + $0x28] sm:$0xff]  }
 0x40a   : > { %v3351_v41 = vpop.f32.mrf.mxu0  ;;  %v2589_v46 = vunpack.c.l.bf16 %v3905_v1  ;;  %3862 = vrcp.f32 %v2139_v34  ;;  %v2590_v26 = vunpack.c.h.bf16 %v3905_v1 }
 0x40b   : > { %v2613_v45 = vadd.f32 %v2581_v10, %v2549_v59  ;;  %v3352_v47 = vadd.f32 %v3351_v41, %v3350_v58  ;;  %v3857_v41 = vpop.eup %3856 }
 0x40c   : > { %v3353_v37 = vpop.f32.mrf.mxu0 }
 0x40d   : > { %2645 = vst [vmem:[%s4758_s16 + $0x10] sm:$0xff] %v2613_v45  ;;  %v2550_v12 = vmul.f32 %v3843_v36, %v3352_v47  ;;  %v2142_v45 = vpop.xlane.xlu0 %2141  ;;  %v2145_v27 = vpop.xlane.xlu1 %2144 }
 0x40e   : > { %v3354_v13 = vpop.f32.mrf.mxu0  ;;  %3864 = vrcp.f32 %v2142_v45 }
 0x40f   : > { %v2614_v54 = vadd.f32 %v2582_v38, %v2550_v12  ;;  %v3355_v61 = vadd.f32 %v3354_v13, %v3353_v37  ;;  %v3859_v13 = vpop.eup %3858  ;;  %3866 = vrcp.f32 %v2145_v27 }
 0x410   : > { %v3356_v49 = vpop.f32.mrf.mxu0 }
 0x411   : > { %2646 = vst [vmem:[%s4758_s16 + $0x18] sm:$0xff] %v2614_v54  ;;  %v2551_v50 = vmul.f32 %v3845_v62, %v3355_v61  ;;  %v3906_v62 = vld [vmem:[%s4315_s12 + $0x30] sm:$0xff]   ;;  %v2151_v3 = vpop.xlane.xlu1 %2150 }
 0x412   : > { %v3357_v15 = vpop.f32.mrf.mxu0  ;;  %v2591_v24 = vunpack.c.l.bf16 %v3906_v62  ;;  %v2592_v30 = vunpack.c.h.bf16 %v3906_v62 }
 0x413   : > { %v2615_v48 = vadd.f32 %v2583_v51, %v2551_v50  ;;  %v3358_v29 = vadd.f32 %v3357_v15, %v3356_v49 }
 0x414   : > { %v3359_v39 = vpop.f32.mrf.mxu0 }
 0x415   : > { %2647 = vst [vmem:[%s4758_s16 + $0x20] sm:$0xff] %v2615_v48  ;;  %v2552_v40 = vmul.f32 %v3847_v14, %v3358_v29  ;;  %v3861_v15 = vpop.eup %3860  ;;  %v2157_v60 = vpop.xlane.xlu1 %2156 }
 0x416   : > { %v3360_v2 = vpop.f32.mrf.mxu0 }
 0x417   : > { %v2616_v18 = vadd.f32 %v2584_v16, %v2552_v40  ;;  %v3361_v19 = vadd.f32 %v3360_v2, %v3359_v39  ;;  %v2148_v16 = vpop.xlane.xlu0 %2147  ;;  %v3863_v2 = vpop.eup %3862 }
 0x418   : > { %v3362_v52 = vpop.f32.mrf.mxu0  ;;  %3868 = vrcp.f32 %v2148_v16 }
 0x419   : > { %2648 = vst [vmem:[%s4758_s16 + $0x28] sm:$0xff] %v2616_v18  ;;  %v2553_v53 = vmul.f32 %v3849_v9, %v3361_v19  ;;  %v3907_v9 = vld [vmem:[%s4315_s12 + $0x38] sm:$0xff]   ;;  %3870 = vrcp.f32 %v2151_v3  ;;  %v2163_v1 = vpop.xlane.xlu1 %2162 }
 0x41a   : > { %v3363_v20 = vpop.f32.mrf.mxu0  ;;  %v2593_v17 = vunpack.c.l.bf16 %v3907_v9  ;;  %v2594_v57 = vunpack.c.h.bf16 %v3907_v9 }
 0x41b   : > { %v2617_v22 = vadd.f32 %v2585_v7, %v2553_v53  ;;  %v3364_v23 = vadd.f32 %v3363_v20, %v3362_v52  ;;  %v3865_v20 = vpop.eup %3864 }
 0x41c   : > { %v3365_v32 = vpop.f32.mrf.mxu0 }
 0x41d   : > { %2649 = vst [vmem:[%s4758_s16 + $0x30] sm:$0xff] %v2617_v22  ;;  %v2554_v43 = vmul.f32 %v3851_v6, %v3364_v23  ;;  %v2169_v62 = vpop.xlane.xlu1 %2168 }
 0x41e   : > { %v3366_v44 = vpop.f32.mrf.mxu0 }
 0x41f   : > { %v2618_v56 = vadd.f32 %v2586_v5, %v2554_v43  ;;  %v3367_v25 = vadd.f32 %v3366_v44, %v3365_v32  ;;  %v2154_v5 = vpop.xlane.xlu0 %2153  ;;  %v3867_v44 = vpop.eup %3866 }
 0x420   : > { %v3368_v8 = vpop.f32.mrf.mxu0  ;;  %3872 = vrcp.f32 %v2154_v5 }
 0x421   : > { %2650 = vst [vmem:[%s4758_s16 + $0x38] sm:$0xff] %v2618_v56  ;;  %v2555_v0 = vmul.f32 %v3853_v28, %v3367_v25  ;;  %v3908_v28 = vld [vmem:[%s4315_s12 + $0x40] sm:$0xff]   ;;  %3874 = vrcp.f32 %v2157_v60 }
 0x422   : > { %v3369_v31 = vpop.f32.mrf.mxu0  ;;  %v2595_v63 = vunpack.c.l.bf16 %v3908_v28  ;;  %v2596_v34 = vunpack.c.h.bf16 %v3908_v28 }
 0x423   : > { %v2619_v33 = vadd.f32 %v2587_v55, %v2555_v0  ;;  %v3370_v42 = vadd.f32 %v3369_v31, %v3368_v8 }
 0x424   : > { %v3371_v4 = vpop.f32.mrf.mxu0  ;;  %v2175_v9 = vpop.xlane.xlu1 %2174 }
 0x425   : > { %2651 = vst [vmem:[%s4758_s16 + $0x40] sm:$0xff] %v2619_v33  ;;  %v2556_v21 = vmul.f32 %v3855_v35, %v3370_v42  ;;  %v3869_v31 = vpop.eup %3868 }
 0x426   : > { %v3372_v10 = vpop.f32.mrf.mxu0 }
 0x427   : > { %v2620_v58 = vadd.f32 %v2588_v11, %v2556_v21  ;;  %v3373_v59 = vadd.f32 %v3372_v10, %v3371_v4  ;;  %v2160_v11 = vpop.xlane.xlu0 %2159  ;;  %v3871_v10 = vpop.eup %3870 }
 0x428   : > { %v3374_v47 = vpop.f32.mrf.mxu0  ;;  %3876 = vrcp.f32 %v2160_v11 }
 0x429   : > { %2652 = vst [vmem:[%s4758_s16 + $0x48] sm:$0xff] %v2620_v58  ;;  %v2557_v38 = vmul.f32 %v3857_v41, %v3373_v59  ;;  %v3909_v41 = vld [vmem:[%s4315_s12 + $0x48] sm:$0xff]   ;;  %3878 = vrcp.f32 %v2163_v1 }
 0x42a   : > { %v3375_v36 = vpop.f32.mrf.mxu0  ;;  %v2597_v45 = vunpack.c.l.bf16 %v3909_v41  ;;  %v2598_v27 = vunpack.c.h.bf16 %v3909_v41 }
 0x42b   : > { %v2621_v37 = vadd.f32 %v2589_v46, %v2557_v38  ;;  %v3376_v12 = vadd.f32 %v3375_v36, %v3374_v47 }
 0x42c   : > { %v3377_v51 = vpop.f32.mrf.mxu0  ;;  %v2181_v28 = vpop.xlane.xlu1 %2180 }
 0x42d   : > { %2653 = vst [vmem:[%s4758_s16 + $0x50] sm:$0xff] %v2621_v37  ;;  %v2558_v54 = vmul.f32 %v3859_v13, %v3376_v12  ;;  %v3873_v36 = vpop.eup %3872 }
 0x42e   : > { %v3378_v61 = vpop.f32.mrf.mxu0 }
 0x42f   : > { %v2622_v49 = vadd.f32 %v2590_v26, %v2558_v54  ;;  %v3379_v50 = vadd.f32 %v3378_v61, %v3377_v51  ;;  %v2166_v26 = vpop.xlane.xlu0 %2165  ;;  %v3875_v61 = vpop.eup %3874 }
 0x430   : > { %v3380_v48 = vpop.f32.mrf.mxu0  ;;  %3880 = vrcp.f32 %v2166_v26 }
 0x431   : > { %2654 = vst [vmem:[%s4758_s16 + $0x58] sm:$0xff] %v2622_v49  ;;  %v2559_v29 = vmul.f32 %v3861_v15, %v3379_v50  ;;  %v3910_v15 = vld [vmem:[%s4315_s12 + $0x50] sm:$0xff]   ;;  %3882 = vrcp.f32 %v2169_v62 }
 0x432   : > { %v3381_v14 = vpop.f32.mrf.mxu0  ;;  %v2599_v16 = vunpack.c.l.bf16 %v3910_v15  ;;  %v2600_v3 = vunpack.c.h.bf16 %v3910_v15 }
 0x433   : > { %v2623_v39 = vadd.f32 %v2591_v24, %v2559_v29  ;;  %v3382_v40 = vadd.f32 %v3381_v14, %v3380_v48 }
 0x434   : > { %v3383_v7 = vpop.f32.mrf.mxu0  ;;  %v2187_v41 = vpop.xlane.xlu1 %2186 }
 0x435   : > { %2655 = vst [vmem:[%s4758_s16 + $0x60] sm:$0xff] %v2623_v39  ;;  %v2560_v18 = vmul.f32 %v3863_v2, %v3382_v40  ;;  %v3877_v14 = vpop.eup %3876 }
 0x436   : > { %v3384_v19 = vpop.f32.mrf.mxu0 }
 0x437   : > { %v2624_v52 = vadd.f32 %v2592_v30, %v2560_v18  ;;  %v3385_v53 = vadd.f32 %v3384_v19, %v3383_v7  ;;  %v2172_v30 = vpop.xlane.xlu0 %2171  ;;  %v3879_v19 = vpop.eup %3878 }
 0x438   : > { %v3386_v22 = vpop.f32.mrf.mxu0  ;;  %3884 = vrcp.f32 %v2172_v30 }
 0x439   : > { %2656 = vst [vmem:[%s4758_s16 + $0x68] sm:$0xff] %v2624_v52  ;;  %v2561_v23 = vmul.f32 %v3865_v20, %v3385_v53  ;;  %v3911_v20 = vld [vmem:[%s4315_s12 + $0x58] sm:$0xff]   ;;  %3886 = vrcp.f32 %v2175_v9 }
 0x43a   : > { %v3387_v6 = vpop.f32.mrf.mxu0  ;;  %v2601_v5 = vunpack.c.l.bf16 %v3911_v20  ;;  %v2602_v60 = vunpack.c.h.bf16 %v3911_v20 }
 0x43b   : > { %v2625_v32 = vadd.f32 %v2593_v17, %v2561_v23  ;;  %v3388_v43 = vadd.f32 %v3387_v6, %v3386_v22 }
 0x43c   : > { %v3389_v55 = vpop.f32.mrf.mxu0  ;;  %v2193_v15 = vpop.xlane.xlu1 %2192 }
 0x43d   : > { %2657 = vst [vmem:[%s4758_s16 + $0x70] sm:$0xff] %v2625_v32  ;;  %v2562_v56 = vmul.f32 %v3867_v44, %v3388_v43  ;;  %v3881_v6 = vpop.eup %3880 }
 0x43e   : > { %v3390_v25 = vpop.f32.mrf.mxu0 }
 0x43f   : > { %v2626_v8 = vadd.f32 %v2594_v57, %v2562_v56  ;;  %v3391_v0 = vadd.f32 %v3390_v25, %v3389_v55  ;;  %v2178_v57 = vpop.xlane.xlu0 %2177  ;;  %v3883_v25 = vpop.eup %3882 }
 0x440   : > { %v3392_v33 = vpop.f32.mrf.mxu0  ;;  %3888 = vrcp.f32 %v2178_v57 }
 0x441   : > { %2658 = vst [vmem:[%s4758_s16 + $0x78] sm:$0xff] %v2626_v8  ;;  %v2563_v42 = vmul.f32 %v3869_v31, %v3391_v0  ;;  %v3912_v31 = vld [vmem:[%s4315_s12 + $0x60] sm:$0xff]   ;;  %3890 = vrcp.f32 %v2181_v28 }
 0x442   : > { %v3393_v35 = vpop.f32.mrf.mxu0  ;;  %v2603_v11 = vunpack.c.l.bf16 %v3912_v31  ;;  %v2604_v1 = vunpack.c.h.bf16 %v3912_v31 }
 0x443   : > { %v2627_v4 = vadd.f32 %v2595_v63, %v2563_v42  ;;  %v3394_v21 = vadd.f32 %v3393_v35, %v3392_v33 }
 0x444   : > { %v3395_v46 = vpop.f32.mrf.mxu0 }
 0x445   : > { %2659 = vst [vmem:[%s4758_s16 + $0x80] sm:$0xff] %v2627_v4  ;;  %v2564_v58 = vmul.f32 %v3871_v10, %v3394_v21  ;;  %v3885_v35 = vpop.eup %3884 }
 0x446   : > { %v3396_v59 = vpop.f32.mrf.mxu0 }
 0x447   : > { %v2628_v47 = vadd.f32 %v2596_v34, %v2564_v58  ;;  %v3397_v38 = vadd.f32 %v3396_v59, %v3395_v46  ;;  %v2184_v34 = vpop.xlane.xlu0 %2183  ;;  %v3887_v59 = vpop.eup %3886 }
 0x448   : > { %v3398_v37 = vpop.f32.mrf.mxu0  ;;  %3892 = vrcp.f32 %v2184_v34 }
 0x449   : > { %2660 = vst [vmem:[%s4758_s16 + $0x88] sm:$0xff] %v2628_v47  ;;  %v2565_v12 = vmul.f32 %v3873_v36, %v3397_v38  ;;  %v3913_v36 = vld [vmem:[%s4315_s12 + $0x68] sm:$0xff]   ;;  %3894 = vrcp.f32 %v2187_v41 }
 0x44a   : > { %v3399_v13 = vpop.f32.mrf.mxu0  ;;  %v2605_v26 = vunpack.c.l.bf16 %v3913_v36  ;;  %v2606_v62 = vunpack.c.h.bf16 %v3913_v36 }
 0x44b   : > { %v2629_v51 = vadd.f32 %v2597_v45, %v2565_v12  ;;  %v3400_v54 = vadd.f32 %v3399_v13, %v3398_v37 }
 0x44c   : > { %v3401_v24 = vpop.f32.mrf.mxu0 }
 0x44d   : > { %2661 = vst [vmem:[%s4758_s16 + $0x90] sm:$0xff] %v2629_v51  ;;  %v2566_v49 = vmul.f32 %v3875_v61, %v3400_v54  ;;  %v3889_v13 = vpop.eup %3888 }
 0x44e   : > { %v3402_v50 = vpop.f32.mrf.mxu0 }
 0x44f   : > { %v2630_v48 = vadd.f32 %v2598_v27, %v2566_v49  ;;  %v3403_v29 = vadd.f32 %v3402_v50, %v3401_v24  ;;  %v2190_v27 = vpop.xlane.xlu0 %2189  ;;  %v3891_v50 = vpop.eup %3890 }
 0x450   : > { %v3404_v39 = vpop.f32.mrf.mxu0  ;;  %3896 = vrcp.f32 %v2190_v27 }
 0x451   : > { %2662 = vst [vmem:[%s4758_s16 + $0x98] sm:$0xff] %v2630_v48  ;;  %v2567_v40 = vmul.f32 %v3877_v14, %v3403_v29  ;;  %v3914_v14 = vld [vmem:[%s4315_s12 + $0x70] sm:$0xff]   ;;  %3898 = vrcp.f32 %v2193_v15 }
 0x452   : > { %v3405_v2 = vpop.f32.mrf.mxu0  ;;  %v2607_v30 = vunpack.c.l.bf16 %v3914_v14 }
 0x453   : > { %v2631_v7 = vadd.f32 %v2599_v16, %v2567_v40  ;;  %v3406_v18 = vadd.f32 %v3405_v2, %v3404_v39 }
 0x454   : > { %v3407_v17 = vpop.f32.mrf.mxu0 }
 0x455   : > { %2663 = vst [vmem:[%s4758_s16 + $0xa0] sm:$0xff] %v2631_v7  ;;  %v2568_v52 = vmul.f32 %v3879_v19, %v3406_v18  ;;  %v3893_v2 = vpop.eup %3892  ;;  %v2608_v19 = vunpack.c.h.bf16 %v3914_v14 }
 0x456   : > { %v3408_v53 = vpop.f32.mrf.mxu0 }
 0x457   : > { %v2632_v22 = vadd.f32 %v2600_v3, %v2568_v52  ;;  %v3409_v23 = vadd.f32 %v3408_v53, %v3407_v17  ;;  %v3895_v52 = vpop.eup %3894 }
 0x458   : > { %v3410_v32 = vpop.f32.mrf.mxu0 }
 0x459   : > { %2664 = vst [vmem:[%s4758_s16 + $0xa8] sm:$0xff] %v2632_v22  ;;  %v2569_v43 = vmul.f32 %v3881_v6, %v3409_v23  ;;  %v3915_v22 = vld [vmem:[%s4315_s12 + $0x78] sm:$0xff]   ;;  %s4030_s12 = scalar_lea.vmem %s4029_s9, 8192 }
 0x45a   : > { %v3411_v44 = vpop.f32.mrf.mxu0  ;;  %v2609_v23 = vunpack.c.l.bf16 %v3915_v22  ;;  %p4032_p11 = scmp.lt.s32.totalorder %s4030_s12, %s4024_s14 }
 0x45b   : > { %v2633_v55 = vadd.f32 %v2601_v5, %v2569_v43  ;;  %v3412_v56 = vadd.f32 %v3411_v44, %v3410_v32 }
 0x45c   : > { %v3413_v63 = vpop.f32.mrf.mxu0  ;;  %p4033_p9 = por %p4032_p11, %p4031_p2 }
 0x45d   : > { %2665 = vst [vmem:[%s4758_s16 + $0xb0] sm:$0xff] %v2633_v55  ;;  %v2570_v8 = vmul.f32 %v3883_v25, %v3412_v56  ;;  %v3897_v32 = vpop.eup %3896  ;;  %v2610_v55 = vunpack.c.h.bf16 %v3915_v22 }
 0x45e   : > { %v3414_v0 = vpop.f32.mrf.mxu0  ;;  %v3899_v28 = vpop.eup %3898  ;;  %p4034_p12 = pnand %p4033_p9, %p4027_p8 }
 0x45f   : > { %v2634_v33 = vadd.f32 %v2602_v60, %v2570_v8  ;;  %v3415_v42 = vadd.f32 %v3414_v0, %v3413_v63 }
 0x460   : > { %v3416_v4 = vpop.f32.mrf.mxu0 }
 0x461   : > { %2666 = vst [vmem:[%s4758_s16 + $0xb8] sm:$0xff] %v2634_v33  ;;  %v2571_v21 = vmul.f32 %v3885_v35, %v3415_v42 }
 0x462   : > { %v3417_v10 = vpop.f32.mrf.mxu0 }
 0x463   : > { %v2635_v46 = vadd.f32 %v2603_v11, %v2571_v21  ;;  %v3418_v58 = vadd.f32 %v3417_v10, %v3416_v4 }
 0x464   : > { %v3419_v45 = vpop.f32.mrf.mxu0 }
 0x465   : > { %2667 = vst [vmem:[%s4758_s16 + $0xc0] sm:$0xff] %v2635_v46  ;;  %v2572_v47 = vmul.f32 %v3887_v59, %v3418_v58 }
 0x466   : > { %v3420_v38 = vpop.f32.mrf.mxu0 }
 0x467   : > { %v2636_v37 = vadd.f32 %v2604_v1, %v2572_v47  ;;  %v3421_v12 = vadd.f32 %v3420_v38, %v3419_v45 }
 0x468   : > { %v3422_v51 = vpop.f32.mrf.mxu0 }
 0x469   : > { %2668 = vst [vmem:[%s4758_s16 + $0xc8] sm:$0xff] %v2636_v37  ;;  %v2573_v54 = vmul.f32 %v3889_v13, %v3421_v12 }
 0x46a   : > { %v3423_v61 = vpop.f32.mrf.mxu0 }
 0x46b   : > { %v2637_v24 = vadd.f32 %v2605_v26, %v2573_v54  ;;  %v3424_v49 = vadd.f32 %v3423_v61, %v3422_v51 }
 0x46c   : > { %v3425_v16 = vpop.f32.mrf.mxu0 }
 0x46d   : > { %2669 = vst [vmem:[%s4758_s16 + $0xd0] sm:$0xff] %v2637_v24  ;;  %v2574_v48 = vmul.f32 %v3891_v50, %v3424_v49 }
 0x46e   : > { %v3426_v29 = vpop.f32.mrf.mxu0 }
 0x46f   : > { %v2638_v39 = vadd.f32 %v2606_v62, %v2574_v48  ;;  %v3427_v40 = vadd.f32 %v3426_v29, %v3425_v16 }
 0x470   : > { %v3428_v3 = vpop.f32.mrf.mxu0 }
 0x471   : > { %2670 = vst [vmem:[%s4758_s16 + $0xd8] sm:$0xff] %v2638_v39  ;;  %v2575_v7 = vmul.f32 %v3893_v2, %v3427_v40 }
 0x472   : > { %v3429_v18 = vpop.f32.mrf.mxu0 }
 0x473   : > { %v2639_v9 = vadd.f32 %v2607_v30, %v2575_v7  ;;  %v3430_v17 = vadd.f32 %v3429_v18, %v3428_v3 }
 0x474   : > { %v3431_v53 = vpop.f32.mrf.mxu0 }
 0x475   : > { %2671 = vst [vmem:[%s4758_s16 + $0xe0] sm:$0xff] %v2639_v9  ;;  %v2576_v20 = vmul.f32 %v3895_v52, %v3430_v17 }
 0x476   : > { %v3432_v5 = vpop.f32.mrf.mxu0 }
 0x477   : > { %v2640_v6 = vadd.f32 %v2608_v19, %v2576_v20  ;;  %v3433_v57 = vadd.f32 %v3432_v5, %v3431_v53 }
 0x478   : > { %v3434_v43 = vpop.f32.mrf.mxu0 }
 0x479   : > { %2672 = vst [vmem:[%s4758_s16 + $0xe8] sm:$0xff] %v2640_v6  ;;  %v2577_v44 = vmul.f32 %v3897_v32, %v3433_v57 }
 0x47a   : > { %v3435_v60 = vpop.f32.mrf.mxu0 }
 0x47b   : > { %v2641_v56 = vadd.f32 %v2609_v23, %v2577_v44  ;;  %v3436_v25 = vadd.f32 %v3435_v60, %v3434_v43 }
 0x47d   : > { %2673 = vst [vmem:[%s4758_s16 + $0xf0] sm:$0xff] %v2641_v56  ;;  %v2578_v63 = vmul.f32 %v3899_v28, %v3436_v25 }
 0x47f   : > { %v2642_v8 = vadd.f32 %v2610_v55, %v2578_v63 }
 0x481   : > { %2674 = vst [vmem:[%s4758_s16 + $0xf8] sm:$0xff] %v2642_v8 }
 0x482   : > { %4037 = shalt.err (!%p4034_p12)
}
 0x483   : > { %s4038_s4 = scalar_lea.hbm %s4811_s19, 4096  ;;  %s4042_s27 = scalar_lea.hbm %s4868_s6, 8192 }
 0x484   : > { %p4039_p13 = scmp.ne.s32.totalorder %s4811_s19, %s4038_s4  ;;  %p4043_p10 = scmp.lt.s32.totalorder %s4811_s19, %s4868_s6 }
 0x485   : > { %p4044_p7 = scmp.lt.s32.totalorder %s4042_s27, %s4038_s4 }
 0x486   : > { %p4040_p0 = pnand %p4039_p13, %p4259_p3 }
 0x487   : > { %p4045_p1 = por %p4044_p7, %p4043_p10 }
 0x488   : > { %p4041_p5 = pneg %p4040_p0 }
 0x48a   : > { %p4046_p4 = pnand %p4045_p1, %p4041_p5 }
 0x48c   : > { %4049 = shalt.err (!%p4046_p4)
}
 0x48d   : > { %s4128_s11 = smov 128   ;;  %s4129_s2 = smov 8  }
 0x48e   : > { %3513 = dma.vmem_to_hbm [thread:$0]  (%p4259_p3), %s4813_s10, 4096, %s4811_s19, %s2676_s8, %s4128_s11, %s4128_s11, %s4129_s2  }
 0x48f PF: > { %s2706_s16 = sand.u32 1, %s4096_s21   ;;  %p4930_p8 = scmp.ge.s32.totalorder %s4116_s26, 2 }
 0x490   : > { %s2707_s17 = scalar_lea.sflag [#allocation6], %s2706_s16 }
 0x491   : > { %p3530_p2 = pnand %p4930_p8, %p4210_p6 }
 0x493   : > { %p3531_p11 = pneg %p3530_p2 }
 0x495   : > { %4091 = dma.done.wait (%p3531_p11), %s2707_s17, 4096  }
 0x496   : > { %4093 = vsyncadd (%p3531_p11), %s2707_s17, 4294963200  ;;  %s26_s26 = sadd.s32 1, %s4116_s26   ;;  %s4931_s13 = sld [smem:[#allocation18_spill]] }
 0x497   : > { %p23_p9 = scmp.ge.s32.totalorder %s26_s26, 4   ;;  %s4932_s21 = smov %s4100_s22 }
 0x498   : > { %s4933_s22 = smov %s4104_s23  ;;  %s4934_s23 = smov %s4270_s18 }
 0x499   : > { %s4935_s24 = smov %s4112_s25  ;;  %25 = sbr.rel (!%p23_p9) target bundleno = 14 (0xe), region = 114 }
 0x49c   : > { %s4936_s25 = smov %s4931_s13 }
 0x49e   :  { %2712 = vsyncpa [#allocation5], 1 }
 0x49f   :  { %2714 = vsyncpa [#allocation5 + $0x1], 1 }
 0x4a0   :  { %2715 = vsyncpa [#allocation8], 1 }
 0x4a1   :  { %2717 = vsyncpa [#allocation8 + $0x1], 1 }
 0x4a2   :  { %2718 = vsyncpa [#allocation11], 1 }
 0x4a3   :  { %2719 = vsyncpa [#allocation6], 1 }
 0x4a4   :  { %2721 = vsyncpa [#allocation6 + $0x1], 1 }

</bundles_post_ra>
